<compile_context>
chip_gen: v7x
topology: tpu7x:2x2x1
jax: 0.10.0
libtpu: 0.0.40
codegen_flags: <defaults>
</compile_context>

<pallas_src>
import math

import jax
import jax.numpy as jnp
from jax.experimental import pallas as pl
from jax.experimental.pallas import tpu as pltpu


def naop_kernel(adj_ref, xk_ref, xi_ref, wg_ref, bg_ref, wl_ref, bl_ref,
                o_ref, accx_ref, rowsum_ref, accout_ref):
    """Fused NaOp tile: reassociated GCN aggregation + linear skip + ReLU.

    Grid = (row tiles [parallel], K tiles over the node dim [arbitrary, last]).
    """
    k = pl.program_id(1)

    @pl.when(k == 0)
    def _init():
        accx_ref[...] = jnp.zeros_like(accx_ref)
        rowsum_ref[...] = jnp.zeros_like(rowsum_ref)
        # Linear skip path for this row tile, computed once, up front, so the
        # finalize step only has the aggregation matmul + epilogue left.
        accout_ref[...] = jnp.dot(xi_ref[...], wl_ref[...],
                                  preferred_element_type=jnp.float32) + bl_ref[...]

    adj = adj_ref[...]                                              # (TN, TK) bf16
    # Accumulate (A_hat @ x): bf16 MXU inputs, f32 accumulation.
    accx_ref[...] += jnp.dot(adj, xk_ref[...],
                             preferred_element_type=jnp.float32)
    # Row sums of A_hat (XLU lane reduce; free slot next to the MXU push).
    rowsum_ref[...] += jnp.sum(adj.astype(jnp.float32), axis=1, keepdims=True)

    @pl.when(k == pl.num_programs(1) - 1)
    def _finalize():
        # (A_hat @ x) @ W_gcn + rowsum(A_hat)[:, None] * b_gcn == A_hat @ (xW + b)
        agg = jnp.dot(accx_ref[...].astype(jnp.bfloat16), wg_ref[...],
                      preferred_element_type=jnp.float32)
        out = accout_ref[...] + agg + rowsum_ref[...] * bg_ref[...]
        # with_linear=True path + relu; epilogue in f32, cast only at the store.
        o_ref[...] = jnp.maximum(out, 0.0).astype(o_ref.dtype)


def _round_up(a, b):
    return (a + b - 1) // b * b


def naop_forward(x, adj_norm, w_gcn, b_gcn, w_lin, b_lin, *,
                 tile_n=256, tile_k=512):
    N, Din = x.shape
    Dout = w_gcn.shape[1]

    # Clamp tiles for small graphs so padding stays bounded.
    n_up = _round_up(N, 256)
    tile_n = min(tile_n, n_up)
    tile_k = min(tile_k, n_up)

    # Pad: node dim to a multiple of both tile sizes, feature dims to multiples
    # of 128 (lane-dense, unmasked stores). Zero padding is exact for this op;
    # padded rows / lanes are sliced off at the end.
    n_mult = math.lcm(tile_n, tile_k)
    N_p = _round_up(N, n_mult)
    Din_p = _round_up(Din, 128)
    Dout_p = _round_up(Dout, 128)

    def pad2(a, r, c):
        return jnp.pad(a, ((0, r - a.shape[0]), (0, c - a.shape[1])))

    # bf16 matmul inputs, f32 accumulation / epilogue.
    x_p = pad2(x, N_p, Din_p).astype(jnp.bfloat16)
    adj_p = pad2(adj_norm, N_p, N_p).astype(jnp.bfloat16)
    wg_p = pad2(w_gcn, Din_p, Dout_p).astype(jnp.bfloat16)
    wl_p = pad2(w_lin, Din_p, Dout_p).astype(jnp.bfloat16)
    bg_p = pad2(b_gcn, 1, Dout_p).astype(jnp.float32)
    bl_p = pad2(b_lin, 1, Dout_p).astype(jnp.float32)

    grid = (N_p // tile_n, N_p // tile_k)

    out_p = pl.pallas_call(
        naop_kernel,
        out_shape=jax.ShapeDtypeStruct((N_p, Dout_p), jnp.float32),
        grid_spec=pltpu.PrefetchScalarGridSpec(
            num_scalar_prefetch=0,
            grid=grid,
            in_specs=[
                pl.BlockSpec((tile_n, tile_k), lambda i, k: (i, k)),   # A_hat tile
                pl.BlockSpec((tile_k, Din_p), lambda i, k: (k, 0)),    # x (contraction tiles)
                pl.BlockSpec((tile_n, Din_p), lambda i, k: (i, 0)),    # x (row tile, linear path)
                pl.BlockSpec((Din_p, Dout_p), lambda i, k: (0, 0)),    # W_gcn
                pl.BlockSpec((1, Dout_p), lambda i, k: (0, 0)),        # b_gcn
                pl.BlockSpec((Din_p, Dout_p), lambda i, k: (0, 0)),    # W_lin
                pl.BlockSpec((1, Dout_p), lambda i, k: (0, 0)),        # b_lin
            ],
            out_specs=pl.BlockSpec((tile_n, Dout_p), lambda i, k: (i, 0)),
            scratch_shapes=[
                pltpu.VMEM((tile_n, Din_p), jnp.float32),    # accumulator for A_hat @ x
                pltpu.VMEM((tile_n, 1), jnp.float32),        # accumulator for rowsum(A_hat)
                pltpu.VMEM((tile_n, Dout_p), jnp.float32),   # output accumulator (linear path)
            ],
        ),
        compiler_params=pltpu.CompilerParams(
            dimension_semantics=("parallel", "arbitrary"),
            vmem_limit_bytes=32 * 1024 * 1024,
        ),
    )(adj_p, x_p, x_p, wg_p, bg_p, wl_p, bl_p)

    return out_p[:N, :Dout]


def build_normalized_adjacency(edge_index, num_nodes):
    """D^{-1/2} (A + A^T + I) D^{-1/2} as a dense (N, N) float32 matrix."""
    # TODO(synk): sparse scatter from edge_index has no clean Pallas equivalent
    # at tiny irregular sizes; done once in plain JAX (glue, not the hot path).
    src, dst = edge_index[0], edge_index[1]
    adj = jnp.zeros((num_nodes, num_nodes), jnp.float32)
    adj = adj.at[src, dst].set(1.0)
    adj = jnp.maximum(adj, adj.T)                                           # undirected
    adj = jnp.minimum(adj + jnp.eye(num_nodes, dtype=jnp.float32), 1.0)     # self loops
    deg = adj.sum(axis=1)
    d_inv_sqrt = jax.lax.rsqrt(deg)
    return d_inv_sqrt[:, None] * adj * d_inv_sqrt[None, :]


def reference_forward(x, adj_norm, w_gcn, b_gcn, w_lin, b_lin):
    agg = adj_norm @ (x @ w_gcn + b_gcn)
    lin = x @ w_lin + b_lin
    return jnp.maximum(agg + lin, 0.0)


if __name__ == "__main__":
    key = jax.random.PRNGKey(0)
    k_x, k_e, k_wg, k_bg, k_wl, k_bl = jax.random.split(key, 6)

    N, E = 512, 2048          # nodes, edges
    in_dim, out_dim = 64, 32

    # Inputs: node features + edge list (graph data).
    x = jax.random.normal(k_x, (N, in_dim), dtype=jnp.float32)
    edge_index = jax.random.randint(k_e, (2, E), 0, N, dtype=jnp.int32)

    # Deterministic parameter init (synthetic weights, not a checkpoint).
    w_gcn = jax.random.normal(k_wg, (in_dim, out_dim), jnp.float32) * 0.1
    b_gcn = jax.random.normal(k_bg, (1, out_dim), jnp.float32) * 0.1
    w_lin = jax.random.normal(k_wl, (in_dim, out_dim), jnp.float32) * 0.1
    b_lin = jax.random.normal(k_bl, (1, out_dim), jnp.float32) * 0.1

    adj_norm = build_normalized_adjacency(edge_index, N)

    out = naop_forward(x, adj_norm, w_gcn, b_gcn, w_lin, b_lin)
    out = jax.block_until_ready(out)
    assert out.shape == (N, out_dim)

    # Reference computed with the same bf16 input quantization the kernel applies
    # (math in f32), isolating kernel correctness from the wrapper-level cast.
    q = lambda a: a.astype(jnp.bfloat16).astype(jnp.float32)
    ref_q = reference_forward(q(x), q(adj_norm), q(w_gcn), b_gcn, q(w_lin), b_lin)
    assert jnp.allclose(out, ref_q, atol=2e-2, rtol=2e-2), float(jnp.max(jnp.abs(out - ref_q)))

    # Loose sanity check against the full-f32 reference (bf16 input rounding only).
    ref_f32 = reference_forward(x, adj_norm, w_gcn, b_gcn, w_lin, b_lin)
    assert jnp.allclose(out, ref_f32, atol=1e-1, rtol=1e-1)

    print("KERNEL_OK")
</pallas_src>

<mosaic_0001>
module attributes {stable_mosaic.version = 11 : i64} {
  func.func @naop_kernel(%arg0: i32, %arg1: i32, %arg2: memref<256x512xbf16, #tpu.memory_space<vmem>>, %arg3: memref<512x128xbf16, #tpu.memory_space<vmem>>, %arg4: memref<256x128xbf16, #tpu.memory_space<vmem>>, %arg5: memref<128x128xbf16, #tpu.memory_space<vmem>>, %arg6: memref<1x128xf32, #tpu.memory_space<vmem>>, %arg7: memref<128x128xbf16, #tpu.memory_space<vmem>>, %arg8: memref<1x128xf32, #tpu.memory_space<vmem>>, %arg9: memref<256x128xf32, #tpu.memory_space<vmem>>, %arg10: memref<256x128xf32, #tpu.memory_space<vmem>>, %arg11: memref<256x1xf32, #tpu.memory_space<vmem>>, %arg12: memref<256x128xf32, #tpu.memory_space<vmem>>) attributes {dimension_semantics = [#tpu.dimension_semantics<parallel>, #tpu.dimension_semantics<arbitrary>], iteration_bounds = array<i64: 2, 1>, scalar_prefetch = 0 : i64, scratch_operands = 3 : i64, tpu.core_type = #tpu.core_type<tc>, window_params = [{transform_indices = @transform_0, window_bounds = array<i64: 256, 512>}, {transform_indices = @transform_1, window_bounds = array<i64: 512, 128>}, {transform_indices = @transform_2, window_bounds = array<i64: 256, 128>}, {pipeline_mode = #tpu.pipeline_mode<synchronous>, transform_indices = @transform_3, window_bounds = array<i64: 128, 128>}, {pipeline_mode = #tpu.pipeline_mode<synchronous>, transform_indices = @transform_4, window_bounds = array<i64: 1, 128>}, {pipeline_mode = #tpu.pipeline_mode<synchronous>, transform_indices = @transform_5, window_bounds = array<i64: 128, 128>}, {pipeline_mode = #tpu.pipeline_mode<synchronous>, transform_indices = @transform_6, window_bounds = array<i64: 1, 128>}, {transform_indices = @transform_7, window_bounds = array<i64: 256, 128>}]} {
    %c0_i32 = arith.constant 0 : i32
    %0 = arith.cmpi eq, %arg1, %c0_i32 : i32
    %1 = arith.extui %0 : i1 to i32
    %c0_i32_0 = arith.constant 0 : i32
    %2 = arith.cmpi ne, %1, %c0_i32_0 : i32
    scf.if %2 {
      %cst_15 = arith.constant 0.000000e+00 : f32
      %18 = vector.broadcast %cst_15 : f32 to vector<256x128xf32>
      %c0_16 = arith.constant 0 : index
      %c0_17 = arith.constant 0 : index
      %19 = vector.load %arg10[%c0_16, %c0_17] : memref<256x128xf32, #tpu.memory_space<vmem>>, vector<256x128xf32>
      tpu.vector_store %arg10[%c0_16, %c0_17], %18 {strides = array<i32>} : memref<256x128xf32, #tpu.memory_space<vmem>>, vector<256x128xf32>,
      %cst_18 = arith.constant 0.000000e+00 : f32
      %20 = vector.broadcast %cst_18 : f32 to vector<256x1xf32>
      %c0_19 = arith.constant 0 : index
      %c0_20 = arith.constant 0 : index
      %21 = vector.load %arg11[%c0_19, %c0_20] : memref<256x1xf32, #tpu.memory_space<vmem>>, vector<256x1xf32>
      tpu.vector_store %arg11[%c0_19, %c0_20], %20 {strides = array<i32>} : memref<256x1xf32, #tpu.memory_space<vmem>>, vector<256x1xf32>,
      %c0_21 = arith.constant 0 : index
      %c0_22 = arith.constant 0 : index
      %22 = vector.load %arg4[%c0_21, %c0_22] : memref<256x128xbf16, #tpu.memory_space<vmem>>, vector<256x128xbf16>
      %c0_23 = arith.constant 0 : index
      %c0_24 = arith.constant 0 : index
      %23 = vector.load %arg7[%c0_23, %c0_24] : memref<128x128xbf16, #tpu.memory_space<vmem>>, vector<128x128xbf16>
      %cst_25 = arith.constant dense<0.000000e+00> : vector<256x128xf32>
      %24 = tpu.matmul %22, %23, %cst_25 {dimension_numbers = #tpu.dot_dimension_numbers<[1], [0], [0], [1], [0, 0, 1, 1], [], []>} : vector<256x128xbf16>, vector<128x128xbf16>, vector<256x128xf32> -> vector<256x128xf32>
      %c0_26 = arith.constant 0 : index
      %c0_27 = arith.constant 0 : index
      %25 = vector.load %arg8[%c0_26, %c0_27] : memref<1x128xf32, #tpu.memory_space<vmem>>, vector<1x128xf32>
      %26 = vector.broadcast %25 : vector<1x128xf32> to vector<256x128xf32>
      %27 = arith.addf %24, %26 : vector<256x128xf32>
      %c0_28 = arith.constant 0 : index
      %c0_29 = arith.constant 0 : index
      %28 = vector.load %arg12[%c0_28, %c0_29] : memref<256x128xf32, #tpu.memory_space<vmem>>, vector<256x128xf32>
      tpu.vector_store %arg12[%c0_28, %c0_29], %27 {strides = array<i32>} : memref<256x128xf32, #tpu.memory_space<vmem>>, vector<256x128xf32>,
    } else {
    }
    %c0 = arith.constant 0 : index
    %c0_1 = arith.constant 0 : index
    %3 = vector.load %arg2[%c0, %c0_1] : memref<256x512xbf16, #tpu.memory_space<vmem>>, vector<256x512xbf16>
    %c0_2 = arith.constant 0 : index
    %c0_3 = arith.constant 0 : index
    %4 = vector.load %arg10[%c0_2, %c0_3] : memref<256x128xf32, #tpu.memory_space<vmem>>, vector<256x128xf32>
    %c0_4 = arith.constant 0 : index
    %c0_5 = arith.constant 0 : index
    %5 = vector.load %arg3[%c0_4, %c0_5] : memref<512x128xbf16, #tpu.memory_space<vmem>>, vector<512x128xbf16>
    %cst = arith.constant dense<0.000000e+00> : vector<256x128xf32>
    %6 = tpu.matmul %3, %5, %cst {dimension_numbers = #tpu.dot_dimension_numbers<[1], [0], [0], [1], [0, 0, 1, 1], [], []>} : vector<256x512xbf16>, vector<512x128xbf16>, vector<256x128xf32> -> vector<256x128xf32>
    %7 = arith.addf %4, %6 : vector<256x128xf32>
    %c0_6 = arith.constant 0 : index
    %c0_7 = arith.constant 0 : index
    %8 = vector.load %arg10[%c0_6, %c0_7] : memref<256x128xf32, #tpu.memory_space<vmem>>, vector<256x128xf32>
    tpu.vector_store %arg10[%c0_6, %c0_7], %7 {strides = array<i32>} : memref<256x128xf32, #tpu.memory_space<vmem>>, vector<256x128xf32>,
    %c0_8 = arith.constant 0 : index
    %c0_9 = arith.constant 0 : index
    %9 = vector.load %arg11[%c0_8, %c0_9] : memref<256x1xf32, #tpu.memory_space<vmem>>, vector<256x1xf32>
    %10 = arith.extf %3 : vector<256x512xbf16> to vector<256x512xf32>
    %cst_10 = arith.constant dense<0.000000e+00> : vector<256xf32>
    %11 = vector.multi_reduction <add>, %10, %cst_10 [1] : vector<256x512xf32> to vector<256xf32>
    %12 = vector.shape_cast %11 : vector<256xf32> to vector<256x1xf32>
    %13 = arith.addf %9, %12 : vector<256x1xf32>
    %c0_11 = arith.constant 0 : index
    %c0_12 = arith.constant 0 : index
    %14 = vector.load %arg11[%c0_11, %c0_12] : memref<256x1xf32, #tpu.memory_space<vmem>>, vector<256x1xf32>
    tpu.vector_store %arg11[%c0_11, %c0_12], %13 {strides = array<i32>} : memref<256x1xf32, #tpu.memory_space<vmem>>, vector<256x1xf32>,
    %c0_i32_13 = arith.constant 0 : i32
    %15 = arith.cmpi eq, %arg1, %c0_i32_13 : i32
    %16 = arith.extui %15 : i1 to i32
    %c0_i32_14 = arith.constant 0 : i32
    %17 = arith.cmpi ne, %16, %c0_i32_14 : i32
    scf.if %17 {
      %c0_15 = arith.constant 0 : index
      %c0_16 = arith.constant 0 : index
      %18 = vector.load %arg10[%c0_15, %c0_16] : memref<256x128xf32, #tpu.memory_space<vmem>>, vector<256x128xf32>
      %19 = arith.truncf %18 : vector<256x128xf32> to vector<256x128xbf16>
      %c0_17 = arith.constant 0 : index
      %c0_18 = arith.constant 0 : index
      %20 = vector.load %arg5[%c0_17, %c0_18] : memref<128x128xbf16, #tpu.memory_space<vmem>>, vector<128x128xbf16>
      %cst_19 = arith.constant dense<0.000000e+00> : vector<256x128xf32>
      %21 = tpu.matmul %19, %20, %cst_19 {dimension_numbers = #tpu.dot_dimension_numbers<[1], [0], [0], [1], [0, 0, 1, 1], [], []>} : vector<256x128xbf16>, vector<128x128xbf16>, vector<256x128xf32> -> vector<256x128xf32>
      %c0_20 = arith.constant 0 : index
      %c0_21 = arith.constant 0 : index
      %22 = vector.load %arg12[%c0_20, %c0_21] : memref<256x128xf32, #tpu.memory_space<vmem>>, vector<256x128xf32>
      %23 = arith.addf %22, %21 : vector<256x128xf32>
      %c0_22 = arith.constant 0 : index
      %c0_23 = arith.constant 0 : index
      %24 = vector.load %arg11[%c0_22, %c0_23] : memref<256x1xf32, #tpu.memory_space<vmem>>, vector<256x1xf32>
      %c0_24 = arith.constant 0 : index
      %c0_25 = arith.constant 0 : index
      %25 = vector.load %arg6[%c0_24, %c0_25] : memref<1x128xf32, #tpu.memory_space<vmem>>, vector<1x128xf32>
      %26 = vector.broadcast %24 : vector<256x1xf32> to vector<256x128xf32>
      %27 = vector.broadcast %25 : vector<1x128xf32> to vector<256x128xf32>
      %28 = arith.mulf %26, %27 : vector<256x128xf32>
      %29 = arith.addf %23, %28 : vector<256x128xf32>
      %cst_26 = arith.constant 0.000000e+00 : f32
      %30 = vector.broadcast %cst_26 : f32 to vector<256x128xf32>
      %31 = arith.maximumf %29, %30 : vector<256x128xf32>
      %c0_27 = arith.constant 0 : index
      %c0_28 = arith.constant 0 : index
      %32 = vector.load %arg9[%c0_27, %c0_28] : memref<256x128xf32, #tpu.memory_space<vmem>>, vector<256x128xf32>
      tpu.vector_store %arg9[%c0_27, %c0_28], %31 {strides = array<i32>} : memref<256x128xf32, #tpu.memory_space<vmem>>, vector<256x128xf32>,
    } else {
    }
    return
  }
  func.func @transform_0(%arg0: i32, %arg1: i32) -> (i32, i32) {
    %c0_i32 = arith.constant 0 : i32
    return %arg0, %arg1 : i32, i32
  }
  func.func @transform_1(%arg0: i32, %arg1: i32) -> (i32, i32) {
    %c0_i32 = arith.constant 0 : i32
    %c0_i32_0 = arith.constant 0 : i32
    return %arg1, %c0_i32 : i32, i32
  }
  func.func @transform_2(%arg0: i32, %arg1: i32) -> (i32, i32) {
    %c0_i32 = arith.constant 0 : i32
    %c0_i32_0 = arith.constant 0 : i32
    return %arg0, %c0_i32 : i32, i32
  }
  func.func @transform_3(%arg0: i32, %arg1: i32) -> (i32, i32) {
    %c0_i32 = arith.constant 0 : i32
    %c0_i32_0 = arith.constant 0 : i32
    %c0_i32_1 = arith.constant 0 : i32
    return %c0_i32, %c0_i32_0 : i32, i32
  }
  func.func @transform_4(%arg0: i32, %arg1: i32) -> (i32, i32) {
    %c0_i32 = arith.constant 0 : i32
    %c0_i32_0 = arith.constant 0 : i32
    %c0_i32_1 = arith.constant 0 : i32
    return %c0_i32, %c0_i32_0 : i32, i32
  }
  func.func @transform_5(%arg0: i32, %arg1: i32) -> (i32, i32) {
    %c0_i32 = arith.constant 0 : i32
    %c0_i32_0 = arith.constant 0 : i32
    %c0_i32_1 = arith.constant 0 : i32
    return %c0_i32, %c0_i32_0 : i32, i32
  }
  func.func @transform_6(%arg0: i32, %arg1: i32) -> (i32, i32) {
    %c0_i32 = arith.constant 0 : i32
    %c0_i32_0 = arith.constant 0 : i32
    %c0_i32_1 = arith.constant 0 : i32
    return %c0_i32, %c0_i32_0 : i32, i32
  }
  func.func @transform_7(%arg0: i32, %arg1: i32) -> (i32, i32) {
    %c0_i32 = arith.constant 0 : i32
    %c0_i32_0 = arith.constant 0 : i32
    return %arg0, %c0_i32 : i32, i32
  }
}

</mosaic_0001>

<bundles_post_ra>
// kernel: tpu_custom_call.1
= control target key start
LH: loop header
LB: loop body
LE: loop exit
PB: predicated region body
PF: predicated region fallthrough
CT: control target
= control target key end

     0   :  { %s5317_s0 = inlined_call_operand.hbm [shape: bf16[512,512], index: 0, kind: input, shape index: {}]   ;;  %s5318_s1 = inlined_call_operand.hbm [shape: bf16[512,128], index: 1, kind: input, shape index: {}]   ;;  %s5319_s2 = inlined_call_operand.hbm [shape: bf16[512,128], index: 2, kind: input, shape index: {}]   ;;  %s5320_s3 = inlined_call_operand.hbm [shape: bf16[128,128], index: 3, kind: input, shape index: {}]   ;;  %s5321_s4 = inlined_call_operand.vmem [shape: f32[1,128], index: 4, kind: input, shape index: {}]   ;;  %s5322_s5 = inlined_call_operand.hbm [shape: bf16[128,128], index: 5, kind: input, shape index: {}]   ;;  %s5323_s6 = inlined_call_operand.vmem [shape: f32[1,128], index: 6, kind: input, shape index: {}]   ;;  %s5324_s7 = inlined_call_operand.hbm [shape: f32[512,128], index: 7, kind: output, shape index: {}]  }
   0x1   :  { %5346 = sst [smem:[#allocation28_spill]] %s5317_s0 }
   0x2   :  { %5347 = sst [smem:[#allocation29_spill]] %s5318_s1 }
   0x3   :  { %5348 = sst [smem:[#allocation30_spill]] %s5324_s7 }
   0x4   :  { %12 = vsyncpa [#allocation6], 0 }
   0x5   :  { %14 = vsyncpa [#allocation6 + $0x1], 0 }
   0x6   :  { %15 = vsyncpa [#allocation9], 0 }
   0x7   :  { %16 = vsyncpa [#allocation13], 0 }
   0x8   :  { %17 = vsyncpa [#allocation7], 0 }
   0x9   :  { %19 = vsyncpa [#allocation7 + $0x1], 0  ;;  %s4256_s24 = smov 0   ;;  %s4258_s25 = smov 0  }
   0xa   :  { %s4260_s26 = smov 0   ;;  %s4262_s27 = smov 0  }
   0xb   :  { %s4264_s28 = smov 0   ;;  %s4266_s29 = smov 0  }
   0xc LB: > { %5349 = sst [smem:[#allocation21_spill]] %s4180_s24  ;;  %s4287_s30 = sadd.s32 4294967295, %s4200_s29   ;;  %s4200_s29 = sphi %s4266_s29, %s25_s29   ;;  %s4196_s28 = sphi %s4264_s28, %s5397_s28   ;;  %s4192_s27 = sphi %s4262_s27, %s5396_s27   ;;  %s4188_s26 = sphi %s4260_s26, %s5395_s26   ;;  %s4184_s25 = sphi %s4258_s25, %s5394_s25   ;;  %s4180_s24 = sphi %s4256_s24, %s5393_s24  }
   0xd   : > { %5350 = sst [smem:[#allocation22_spill]] %s4192_s27  ;;  %s3130_s8 = sadd.s32 4294967294, %s4200_s29  }
   0xe   : > { %5351 = sst [smem:[#allocation23_spill]] %s4200_s29  ;;  %p59_p0 = scmp.ne.s32.totalorder %s4184_s25, %s4180_s24 }
   0xf   : > { %p5325_p1 = scmp.eq.s32.totalorder %s4287_s30, 0  ;;  %p225_p3 = scmp.eq.s32.totalorder %s3130_s8, 1 }
  0x10   : > { %p3131_p5 = scmp.ge.s32.totalorder %s4200_s29, 1  ;;  %p232_p7 = scmp.lt.s32.totalorder %s4200_s29, 3 }
  0x11   : > { %p4296_p4 = por %p5325_p1, %p59_p0  ;;  %p4301_p6 = por %p225_p3, %p59_p0 }
  0x12   : > { %p4306_p8 = pnand %p3131_p5, %p232_p7  ;;  %s4202_s12 = smov [#allocation8]  }
  0x13   : > { %s5352_s9 = scalar_select %p4296_p4, 1, 0 }
  0x14   : > { %s5353_s10 = scalar_select %p4301_p6, 1, 0 }
  0x15   : > { %s5355_s11 = scalar_select %p4306_p8, 1, 0 }
  0x16   : > { %5354 = sst [smem:[#allocation24_spill]] %s5353_s10  ;;  %s247_s13 = sshll.u32 %s4202_s12, 4  ;;  %s248_s13 = int_to_ptr.vmem [resolvable:$true] %s247_s13 }
  0x17   : > { %p3739_p9 = pneg %p4306_p8  ;;  %s37_s15 = sadd.s32 1, %s4196_s28 }
  0x18   : > { %s5357_s1 = sld [smem:[#allocation29_spill]] }
  0x19   : > { %p4315_p11 = pnand %p3739_p9, %p5325_p1 }
  0x1b   : > { %s5356_s14 = scalar_select %p4315_p11, 1, 0 }
  0x1c   : > { %p4328_p13 = pneg %p4315_p11 }
  0x1e   : > { %s3958_s18 = scalar_lea.hbm %s5357_s1, 4096 }
  0x1f   : > { %p3959_p12 = scmp.ne.s32.totalorder %s5357_s1, %s3958_s18  ;;  %p3965_p5 = scmp.lt.u32.totalorder %s3958_s18, %s5357_s1 }
  0x21   : > { %p3961_p0 = pnand %p4328_p13, %p3959_p12 }
  0x23   : > { %p3962_p3 = pneg %p3961_p0 }
  0x25   : > { %p3967_p7 = pnand %p3965_p5, %p3962_p3 }
  0x27   : > { %3970 = shalt.err (!%p3967_p7)
}
  0x28   : > { %s3971_s8 = scalar_lea.vmem %s248_s13, 4096  ;;  %p3979_p2 = scmp.lt.s32.totalorder %s248_s13, %s248_s13 }
  0x29   : > { %p3972_p9 = scmp.ne.s32.totalorder %s248_s13, %s3971_s8  ;;  %p3980_p6 = scmp.lt.s32.totalorder %s3971_s8, %s3971_s8 }
  0x2b   : > { %p3974_p10 = pnand %p3972_p9, %p4328_p13  ;;  %p3981_p4 = por %p3980_p6, %p3979_p2 }
  0x2d   : > { %p3975_p1 = pneg %p3974_p10 }
  0x2f   : > { %p3982_p8 = pnand %p3981_p4, %p3975_p1 }
  0x31   : > { %3985 = shalt.err (!%p3982_p8)
}
  0x32   : > { %s5328_s12 = smov 64   ;;  %s5330_s16 = smov 4  }
  0x33   : > { %3742 = dma.hbm_to_vmem [thread:$0]  (!%p4315_p11), %s5357_s1, 4096, %s248_s13, [#allocation9], %s5328_s12, %s5328_s12, %s5330_s16  }
  0x34   : > { %p39_p1 = scmp.ge.s32.totalorder %s37_s15, 2  ;;  %s46_s19 = sadd.s32 1, %s4188_s26 }
  0x35   : > { %p53_p2 = scmp.ne.s32.totalorder %s4188_s26, %s4184_s25  ;;  %p54_p4 = scmp.eq.s32.totalorder %s4200_s29, 0 }
  0x36   : > { %s5399_s15 = smov (%p39_p1, %s37_s15), 0  ;;  %p5361_p8 = scmp.eq.s32.totalorder %s4287_s30, 1 }
  0x37   : > { %5359 = sst [smem:[#allocation25_spill]] %s5399_s15  ;;  %p4353_p6 = por %p54_p4, %p53_p2 }
  0x38   : > { %p4359_p10 = por %p5361_p8, %p53_p2  ;;  %s41_s23 = ssub.s32 %s4196_s28, %s5399_s15 }
  0x39   : > { %p3763_p12 = scmp.lt.s32.totalorder %s4200_s29, 2  ;;  %p44_p0 = scmp.eq.s32.totalorder %s41_s23, 0 }
  0x3a   : > { %s5362_s22 = scalar_select %p4359_p10, 1, 0 }
  0x3b   : > { %s293_s13 = sand.u32 1, %s4200_s29   ;;  %s295_s8 = sand.u32 1, %s4188_s26  }
  0x3c   : > { %5363 = sst [smem:[#allocation26_spill]] %s5362_s22  ;;  %s3136_s18 = sshll.u32 %s295_s8, 9 }
  0x3d   : > { %s4369_s17 = scalar_select %p44_p0, %s4188_s26, %s46_s19  }
  0x3e   : > { %s3286_s12 = sshll.u32 %s4196_s28, 13  ;;  %s5365_s0 = sld [smem:[#allocation28_spill]] }
  0x3f   : > { %5364 = sst [smem:[#allocation27_spill]] %s4369_s17  ;;  %s297_s24 = scalar_lea.vmem [#allocation5], %s3136_s18 }
  0x40   : > { %s307_s15 = sshll.u32 %s297_s24, 4  ;;  %p4381_p3 = pnand %p3763_p12, %p4353_p6  ;;  %s4385_s15 = int_to_ptr.vmem [resolvable:$true] %s307_s15 }
  0x41   : > { %s4387_s19 = scalar_lea.sflag [#allocation6], %s293_s13 }
  0x42   : > { %s5366_s23 = scalar_select %p4381_p3, 1, 0 }
  0x43   : > { %p5343_p7 = pneg %p4381_p3 }
  0x44   : > { %s4377_s10 = scalar_lea.hbm %s5365_s0, %s3286_s12  ;;  %s3991_s16 = scalar_lea.hbm %s5365_s0, 16384 }
  0x45   : > { %s3986_s1 = scalar_lea.hbm %s4377_s10, 8192  ;;  %p3992_p2 = scmp.lt.u32.totalorder %s4377_s10, %s5365_s0 }
  0x46   : > { %p3987_p5 = scmp.ne.s32.totalorder %s4377_s10, %s3986_s1  ;;  %p3993_p4 = scmp.lt.u32.totalorder %s3991_s16, %s3986_s1 }
  0x47   : > { %p3995_p8 = scmp.lt.u32.totalorder %s3986_s1, %s4377_s10 }
  0x48   : > { %p3989_p9 = pnand %p5343_p7, %p3987_p5  ;;  %p3994_p6 = por %p3993_p4, %p3992_p2 }
  0x4a   : > { %p3990_p1 = pneg %p3989_p9  ;;  %p3996_p12 = por %p3995_p8, %p3994_p6 }
  0x4c   : > { %p3997_p0 = pnand %p3996_p12, %p3990_p1 }
  0x4e   : > { %4000 = shalt.err (!%p3997_p0)
}
  0x4f   : > { %s4001_s13 = scalar_lea.vmem %s4385_s15, 8192  ;;  %s4205_s24 = smov [#allocation5]  }
  0x50   : > { %p4002_p5 = scmp.ne.s32.totalorder %s4385_s15, %s4001_s13  ;;  %s4006_s12 = sshll.u32 %s4205_s24, 4  ;;  %s4007_s12 = int_to_ptr.vmem [resolvable:$false] %s4006_s12 }
  0x51   : > { %s4008_s20 = scalar_lea.vmem %s4007_s12, 16384  ;;  %p4009_p11 = scmp.lt.s32.totalorder %s4385_s15, %s4007_s12 }
  0x52   : > { %p4004_p9 = pnand %p4002_p5, %p5343_p7  ;;  %p4010_p2 = scmp.lt.s32.totalorder %s4008_s20, %s4001_s13 }
  0x54   : > { %p4005_p10 = pneg %p4004_p9  ;;  %p4011_p4 = por %p4010_p2, %p4009_p11 }
  0x56   : > { %p4012_p6 = pnand %p4011_p4, %p4005_p10 }
  0x58   : > { %4015 = shalt.err (!%p4012_p6)
}
  0x59   : > { %s4206_s1 = smov 256   ;;  %s4207_s16 = smov 16  }
  0x5a   : > { %3752 = dma.hbm_to_vmem [thread:$0]  (!%p4381_p3), %s4377_s10, 8192, %s4385_s15, %s4387_s19, %s4206_s1, %s4206_s1, %s4207_s16  }
  0x5b   : > { %s3140_s18 = sshll.u32 %s295_s8, 7  ;;  %s4208_s24 = smov [#allocation11]  }
  0x5c   : > { %s260_s0 = sshll.u32 %s4208_s24, 4  ;;  %s321_s17 = scalar_lea.vmem [#allocation10], %s3140_s18  ;;  %s261_s0 = int_to_ptr.vmem [resolvable:$true] %s260_s0 }
  0x5d   : > { %s328_s12 = sshll.u32 %s321_s17, 4  ;;  %s4016_s29 = scalar_lea.hbm %s5320_s3, 1024  ;;  %s4444_s12 = int_to_ptr.vmem [resolvable:$true] %s328_s12 }
  0x5e   : > { %p4017_p11 = scmp.ne.s32.totalorder %s5320_s3, %s4016_s29  ;;  %p4023_p8 = scmp.lt.u32.totalorder %s4016_s29, %s5320_s3 }
  0x60   : > { %p4019_p10 = pnand %p4017_p11, %p4328_p13 }
  0x62   : > { %p4020_p1 = pneg %p4019_p10 }
  0x64   : > { %p4025_p12 = pnand %p4023_p8, %p4020_p1 }
  0x66   : > { %4028 = shalt.err (!%p4025_p12)
}
  0x67   : > { %s4029_s15 = scalar_lea.vmem %s261_s0, 1024  ;;  %p4037_p2 = scmp.lt.s32.totalorder %s261_s0, %s261_s0 }
  0x68   : > { %p4030_p0 = scmp.ne.s32.totalorder %s261_s0, %s4029_s15  ;;  %p4038_p4 = scmp.lt.s32.totalorder %s4029_s15, %s4029_s15 }
  0x6a   : > { %p4032_p5 = pnand %p4030_p0, %p4328_p13  ;;  %p4039_p6 = por %p4038_p4, %p4037_p2 }
  0x6c   : > { %p4033_p9 = pneg %p4032_p5 }
  0x6e   : > { %p4040_p7 = pnand %p4039_p6, %p4033_p9 }
  0x70   : > { %4043 = shalt.err (!%p4040_p7)
}
  0x71   : > { %p5367_p11 = scmp.ne.s32.totalorder %s5356_s14, 0  ;;  %s5368_s7 = smov 4  }
  0x72   : > { %s5369_s22 = smov 64   ;;  %s3287_s8 = sshll.u32 %s4196_s28, 11 }
  0x73   : > { %3745 = dma.hbm_to_vmem [thread:$0]  (!%p5367_p11), %s5320_s3, 1024, %s261_s0, [#allocation9], %s5369_s22, %s5369_s22, %s5368_s7  }
  0x74   : > { %s4209_s17 = smov [#allocation12]   ;;  %s4442_s24 = scalar_lea.hbm %s5319_s2, %s3287_s8 }
  0x75   : > { %s276_s1 = sshll.u32 %s4209_s17, 4  ;;  %s4044_s10 = scalar_lea.hbm %s5322_s5, 1024  ;;  %s277_s1 = int_to_ptr.vmem [resolvable:$true] %s276_s1 }
  0x76   : > { %p4045_p7 = scmp.ne.s32.totalorder %s5322_s5, %s4044_s10  ;;  %p4051_p8 = scmp.lt.u32.totalorder %s4044_s10, %s5322_s5 }
  0x78   : > { %p4047_p10 = pnand %p4045_p7, %p4328_p13 }
  0x7a   : > { %p4048_p1 = pneg %p4047_p10 }
  0x7c   : > { %p4053_p12 = pnand %p4051_p8, %p4048_p1 }
  0x7e   : > { %4056 = shalt.err (!%p4053_p12)
}
  0x7f   : > { %s4057_s8 = scalar_lea.vmem %s277_s1, 1024  ;;  %p4065_p2 = scmp.lt.s32.totalorder %s277_s1, %s277_s1 }
  0x80   : > { %p4058_p0 = scmp.ne.s32.totalorder %s277_s1, %s4057_s8  ;;  %p4066_p4 = scmp.lt.s32.totalorder %s4057_s8, %s4057_s8 }
  0x82   : > { %p4060_p5 = pnand %p4058_p0, %p4328_p13  ;;  %p4067_p6 = por %p4066_p4, %p4065_p2 }
  0x84   : > { %p4061_p9 = pneg %p4060_p5 }
  0x86   : > { %p4068_p3 = pnand %p4067_p6, %p4061_p9 }
  0x88   : > { %4071 = shalt.err (!%p4068_p3)
}
  0x89   : > { %3748 = dma.hbm_to_vmem [thread:$0]  (!%p5367_p11), %s5322_s5, 1024, %s277_s1, [#allocation13], %s5369_s22, %s5369_s22, %s5368_s7  }
  0x8a   : > { %s4072_s21 = scalar_lea.hbm %s4442_s24, 2048  ;;  %p5370_p7 = scmp.ne.s32.totalorder %s5366_s23, 0 }
  0x8b   : > { %p4073_p13 = scmp.ne.s32.totalorder %s4442_s24, %s4072_s21  ;;  %s4077_s13 = scalar_lea.hbm %s5319_s2, 4096 }
  0x8c   : > { %p5371_p10 = pneg %p5370_p7  ;;  %p4078_p8 = scmp.lt.u32.totalorder %s4442_s24, %s5319_s2 }
  0x8d   : > { %p4079_p12 = scmp.lt.u32.totalorder %s4077_s13, %s4072_s21  ;;  %p4081_p5 = scmp.lt.u32.totalorder %s4072_s21, %s4442_s24 }
  0x8e   : > { %p4075_p1 = pnand %p4073_p13, %p5371_p10 }
  0x8f   : > { %p4080_p0 = por %p4079_p12, %p4078_p8 }
  0x90   : > { %p4076_p3 = pneg %p4075_p1 }
  0x91   : > { %p4082_p9 = por %p4081_p5, %p4080_p0 }
  0x93   : > { %p4083_p2 = pnand %p4082_p9, %p4076_p3 }
  0x95   : > { %4086 = shalt.err (!%p4083_p2)
}
  0x96   : > { %s4087_s1 = scalar_lea.vmem %s4444_s12, 2048  ;;  %p5372_p4 = pmov %p5371_p10 }
  0x97   : > { %p4088_p11 = scmp.ne.s32.totalorder %s4444_s12, %s4087_s1  ;;  %s4210_s15 = smov [#allocation10]  }
  0x98   : > { %s4092_s27 = sshll.u32 %s4210_s15, 4  ;;  %s4093_s27 = int_to_ptr.vmem [resolvable:$false] %s4092_s27 }
  0x99   : > { %p4090_p6 = pnand %p4088_p11, %p5372_p4  ;;  %s4094_s0 = scalar_lea.vmem %s4093_s27, 4096 }
  0x9a   : > { %p4095_p10 = scmp.lt.s32.totalorder %s4444_s12, %s4093_s27  ;;  %p4096_p1 = scmp.lt.s32.totalorder %s4094_s0, %s4087_s1 }
  0x9b   : > { %p4091_p13 = pneg %p4090_p6 }
  0x9c   : > { %p4097_p8 = por %p4096_p1, %p4095_p10 }
  0x9e   : > { %p4098_p12 = pnand %p4097_p8, %p4091_p13 }
  0xa0   : > { %4101 = shalt.err (!%p4098_p12)
}
  0xa1   : > { %3755 = dma.hbm_to_vmem [thread:$0]  (!%p5370_p7), %s4442_s24, 2048, %s4444_s12, %s4387_s19, %s5369_s22, %s5369_s22, %s5368_s7  }
  0xa2   : > { %p5373_p3 = scmp.ne.s32.totalorder %s5355_s11, 0 }
  0xa3   : > { %s342_s29 = sand.u32 (!%p5373_p3), 1, %s4287_s30   ;;  %s4498_s8 = sand.u32 (!%p5373_p3), 1, %s4184_s25  }
  0xa4   : > { %340 = sbr.rel (%p5373_p3) target bundleno = 858 (0x35a), region = 48  ;;  %s3144_s17 = sshll.u32 (!%p5373_p3), %s4498_s8, 9 }
  0xa5   : > { %s343_s16 = scalar_lea.sflag (!%p5373_p3), [#allocation6], %s342_s29  ;;  %s4501_s23 = scalar_lea.vmem (!%p5373_p3), [#allocation5], %s3144_s17 }
  0xa6   : > { %p5374_p0 = scmp.ne.s32.totalorder (!%p5373_p3), %s5352_s9, 0 }
  0xab   : > { %4155 = dma.done.wait (%p5374_p0), %s343_s16, 8192  }
  0xac   : > { %4157 = vsyncadd (%p5374_p0), %s343_s16, 4294959104  ;;  %p5375_p7 = scmp.eq.s32.totalorder %s4287_s30, 0 }
  0xae   : > { %4159 = dma.done.wait (%p5375_p7), [#allocation9], 4096   ;;  %p5376_p5 = pmov %p5375_p7 }
  0xaf   : > { %s3146_s11 = sshll.u32 %s4498_s8, 7 }
  0xb0   : > { %4161 = vsyncadd (%p5376_p5), [#allocation9], 4294963200  ;;  %s4512_s19 = scalar_lea.vmem [#allocation10], %s3146_s11 }
  0xb1   : > { %4163 = dma.done.wait (%p5374_p0), %s343_s16, 2048  }
  0xb2   : > { %4165 = vsyncadd (%p5374_p0), %s343_s16, 4294965248  ;;  %p5377_p9 = pmov %p5376_p5 }
  0xb3   : > { %p5378_p2 = pmov %p5376_p5 }
  0xb4   : > { %4167 = dma.done.wait (%p5377_p9), [#allocation9], 1024  }
  0xb5   : > { %4169 = vsyncadd (%p5378_p2), [#allocation9], 4294966272  ;;  %p5379_p11 = pmov %p5378_p2 }
  0xb6   : > { %p5380_p4 = pmov %p5378_p2 }
  0xb7   : > { %4171 = dma.done.wait (%p5379_p11), [#allocation13], 1024  }
  0xb8   : > { %4173 = vsyncadd (%p5380_p4), [#allocation13], 4294966272  ;;  %v3829_v0 = vld [vmem:[#allocation12] sm:$0xff]   ;;  %v3830_v1 = vld [vmem:[#allocation12 + $0x8] sm:$0xff]   ;;  %vm445_vm0 = vcmask 7168   ;;  %s3149_s22 = sshll.u32 %s4498_s8, 8 }
  0xb9   : > { %3561 = vmatprep.subr.bf16.mxu1 %v3829_v0  ;;  %v3831_v2 = vld [vmem:[#allocation12 + $0x10] sm:$0xff]   ;;  %v3832_v3 = vld [vmem:[#allocation12 + $0x18] sm:$0xff]   ;;  %v3837_v4 = vld [vmem:[%s4512_s19] sm:$0xff]   ;;  %s5160_s24 = scalar_lea.vmem [#allocation14], %s3149_s22  ;;  %s5381_s14 = sld [smem:[#allocation22_spill]] }
  0xba   : > { %3562 = vmatpush3.bf16.msra.mxu1 %v3829_v0  ;;  %3577 = vmatprep.mubr.bf16.mxu1 %v3837_v4  ;;  %v3833_v5 = vld [vmem:[#allocation12 + $0x20] sm:$0xff]   ;;  %v3834_v6 = vld [vmem:[#allocation12 + $0x28] sm:$0xff]   ;;  %v3835_v7 = vld [vmem:[#allocation12 + $0x30] sm:$0xff]   ;;  %s2994_s20 = sshll.u32 %s5160_s24, 4  ;;  %s5382_s10 = sld [smem:[#allocation26_spill]]  ;;  %s5265_s20 = int_to_ptr.vmem [resolvable:$true] %s2994_s20 }
  0xbb   : > { %3563 = vmatprep.subr.bf16.mxu1 %v3830_v1  ;;  %v3836_v8 = vld [vmem:[#allocation12 + $0x38] sm:$0xff]   ;;  %v3853_v9 = vld [vmem:[#allocation8 + $0xc0] sm:$0xff]   ;;  %v3838_v11 = vld [vmem:[%s4512_s19 + $0x8] sm:$0xff]   ;;  %s5383_s27 = sld [smem:[#allocation30_spill]]  ;;  %s2981_s17 = scalar_lea.sflag [#allocation7], %s4498_s8 }
  0xbc   : > { %3425 = vmatprep.subr.bf16.mxu0 %v3853_v9  ;;  %v3855_v10 = vld [vmem:[#allocation8 + $0x80] sm:$0xff]   ;;  %v3841_v14 = vld [vmem:[%s4512_s19 + $0x10] sm:$0xff]   ;;  %v3843_v15 = vld [vmem:[#allocation8 + $0x48] sm:$0xff]   ;;  %s4102_s16 = scalar_lea.vmem %s5265_s20, 4096 }
  0xbd   : > { %v3839_v12 = vld [vmem:[#allocation8 + $0x40] sm:$0xff]   ;;  %3426 = vmatpush3.bf16.msra.mxu0 %v3855_v10  ;;  %v3859_v16 = vld [vmem:[#allocation8 + $0xc8] sm:$0xff]   ;;  %v3861_v18 = vld [vmem:[#allocation8 + $0xd0] sm:$0xff]   ;;  %p4103_p6 = scmp.ne.s32.totalorder %s5265_s20, %s4102_s16 }
  0xbe   : > { %3564 = vmatpush3.bf16.msra.mxu1 %v3830_v1  ;;  %v3840_v13 = vld [vmem:[#allocation8] sm:$0xff]   ;;  %v3860_v17 = vld [vmem:[#allocation8 + $0x88] sm:$0xff]   ;;  %3427 = vmatprep.subr.bf16.mxu0 %v3859_v16  ;;  %v3863_v19 = vld [vmem:[#allocation8 + $0x90] sm:$0xff]  }
  0xbf   : > { %3565 = vmatprep.subr.bf16.mxu1 %v3831_v2  ;;  %v3844_v20 = vld [vmem:[#allocation8 + $0x8] sm:$0xff]   ;;  %v3842_v21 = vld [vmem:[%s4512_s19 + $0x18] sm:$0xff]   ;;  %v3847_v22 = vld [vmem:[#allocation8 + $0x50] sm:$0xff]   ;;  %s3288_s13 = sshll.u32 %s5381_s14, 12 }
  0xc0   : > { %v3845_v23 = vld [vmem:[%s4512_s19 + $0x20] sm:$0xff]   ;;  %v3848_v24 = vld [vmem:[#allocation8 + $0x10] sm:$0xff]   ;;  %v3851_v25 = vld [vmem:[#allocation8 + $0x58] sm:$0xff]   ;;  %p5385_p13 = scmp.ne.s32.totalorder %s5382_s10, 0 }
  0xc1   : > { %3428 = vmatpush3.bf16.msra.mxu0 %v3860_v17  ;;  %v3867_v26 = vld [vmem:[#allocation8 + $0xd8] sm:$0xff]   ;;  %v3869_v28 = vld [vmem:[#allocation8 + $0xe0] sm:$0xff]   ;;  %v3846_v31 = vld [vmem:[%s4512_s19 + $0x28] sm:$0xff]   ;;  %s5384_s0 = smov %s5383_s27  ;;  %s5263_s29 = scalar_lea.hbm %s5383_s27, %s3288_s13 }
  0xc2   : > { %3566 = vmatpush3.bf16.msra.mxu1 %v3831_v2  ;;  %3429 = vmatprep.subr.bf16.mxu0 %v3861_v18  ;;  %v3868_v27 = vld [vmem:[#allocation8 + $0x98] sm:$0xff]   ;;  %v3871_v29 = vld [vmem:[#allocation8 + $0xa0] sm:$0xff]   ;;  %v3849_v33 = vld [vmem:[%s4512_s19 + $0x30] sm:$0xff]   ;;  %p4104_p10 = pnand %p4103_p6, %p5385_p13 }
  0xc3   : > { %3567 = vmatprep.subr.bf16.mxu1 %v3832_v3  ;;  %v3852_v30 = vld [vmem:[#allocation8 + $0x18] sm:$0xff]   ;;  %v3857_v32 = vld [vmem:[#allocation8 + $0x60] sm:$0xff]   ;;  %v3865_v35 = vld [vmem:[#allocation8 + $0x68] sm:$0xff]  }
  0xc4   : > { %v3858_v34 = vld [vmem:[#allocation8 + $0x20] sm:$0xff]   ;;  %v3875_v36 = vld [vmem:[#allocation8 + $0xe8] sm:$0xff]   ;;  %v3877_v38 = vld [vmem:[#allocation8 + $0xf0] sm:$0xff]   ;;  %p4105_p1 = pneg %p4104_p10 }
  0xc5   : > { %3430 = vmatpush3.bf16.msra.mxu0 %v3863_v19  ;;  %v3876_v37 = vld [vmem:[#allocation8 + $0xa8] sm:$0xff]   ;;  %v3879_v39 = vld [vmem:[#allocation8 + $0xb0] sm:$0xff]   ;;  %v3850_v41 = vld [vmem:[%s4512_s19 + $0x38] sm:$0xff]  }
  0xc6   : > { %3568 = vmatpush3.bf16.msra.mxu1 %v3832_v3  ;;  %3431 = vmatprep.subr.bf16.mxu0 %v3867_v26  ;;  %v3866_v40 = vld [vmem:[#allocation8 + $0x28] sm:$0xff]   ;;  %v3873_v42 = vld [vmem:[#allocation8 + $0x70] sm:$0xff]   ;;  %v3854_v43 = vld [vmem:[%s4512_s19 + $0x40] sm:$0xff]  }
  0xc7   : > { %3569 = vmatprep.subr.bf16.mxu1 %v3833_v5  ;;  %v3874_v44 = vld [vmem:[#allocation8 + $0x30] sm:$0xff]   ;;  %v3883_v45 = vld [vmem:[#allocation8 + $0xf8] sm:$0xff]   ;;  %v4536_v48 = vld [vmem:[%s4501_s23 + $0x8] sm:$0xff] }
  0xc8   : > { %v3884_v46 = vld [vmem:[#allocation8 + $0xb8] sm:$0xff]   ;;  %v4546_v52 = vld [vmem:[%s4501_s23 + $0x28] sm:$0xff]  ;;  %v3862_v57 = vld [vmem:[%s4512_s19 + $0x50] sm:$0xff]  }
  0xc9   : > { %3432 = vmatpush3.bf16.msra.mxu0 %v3868_v27  ;;  %v3881_v47 = vld [vmem:[#allocation8 + $0x78] sm:$0xff]   ;;  %v3856_v56 = vld [vmem:[%s4512_s19 + $0x48] sm:$0xff]   ;;  %v3870_v63 = vld [vmem:[%s4512_s19 + $0x60] sm:$0xff]  }
  0xca   : > { %3570 = vmatpush3.bf16.msra.mxu1 %v3833_v5  ;;  %3433 = vmatprep.subr.bf16.mxu0 %v3869_v28  ;;  %v4539_v49 = vld [vmem:[%s4501_s23 + $0x18] sm:$0xff]  ;;  %v4556_v58 = vld [vmem:[%s4501_s23 + $0x48] sm:$0xff]  ;;  %v3878_v5 = vld [vmem:[%s4512_s19 + $0x70] sm:$0xff]  }
  0xcb   : > { %3571 = vmatprep.subr.bf16.mxu1 %v3834_v6  ;;  %v3178_v50 = vcombine.high %v4536_v48, %v4539_v49  ;;  %v3177_v51 = vcombine.low %v4536_v48, %v4539_v49  ;;  %v4549_v53 = vld [vmem:[%s4501_s23 + $0x38] sm:$0xff]  ;;  %v4568_v0 = vld [vmem:[%s4501_s23 + $0x68] sm:$0xff]  ;;  %v870_v10 = vld [vmem:[%s4501_s23] sm:$0xff]  ;;  %v1966_v28 = vunpack.c.l.bf16 %v4539_v49 }
  0xcc   : > { %v3182_v54 = vcombine.high %v4546_v52, %v4549_v53  ;;  %v3882_v55 = vld [vmem:[#allocation8 + $0x38] sm:$0xff]   ;;  %v3181_v60 = vcombine.low %v4546_v52, %v4549_v53  ;;  %v3872_v4 = vld [vmem:[%s4512_s19 + $0x68] sm:$0xff]  }
  0xcd   : > { %3434 = vmatpush3.bf16.msra.mxu0 %v3871_v29  ;;  %1735 = vmatprep.mubr.bf16.mxu0 %v3178_v50  ;;  %v4559_v59 = vld [vmem:[%s4501_s23 + $0x58] sm:$0xff]  ;;  %v4599_v16 = vld [vmem:[%s4501_s23 + $0xa8] sm:$0xff]  ;;  %v1975_v50 = vunpack.c.h.bf16 %v4549_v53 }
  0xce   : > { %3572 = vmatpush3.bf16.msra.mxu1 %v3834_v6  ;;  %3435 = vmatprep.subr.bf16.mxu0 %v3875_v36  ;;  %v3186_v61 = vcombine.high %v4556_v58, %v4559_v59  ;;  %v3864_v62 = vld [vmem:[%s4512_s19 + $0x58] sm:$0xff]   ;;  %v3185_v2 = vcombine.low %v4556_v58, %v4559_v59  ;;  %v4580_v6 = vld [vmem:[%s4501_s23 + $0x88] sm:$0xff] }
  0xcf   : > { %3573 = vmatprep.subr.bf16.mxu1 %v3835_v7  ;;  %v4571_v1 = vld [vmem:[%s4501_s23 + $0x78] sm:$0xff] }
  0xd0   : > { %v3190_v3 = vcombine.high %v4568_v0, %v4571_v1  ;;  %v4602_v17 = vld [vmem:[%s4501_s23 + $0xb8] sm:$0xff] }
  0xd1   : > { %3436 = vmatpush3.bf16.msra.mxu0 %v3876_v37  ;;  %v878_v37 = vld [vmem:[%s4501_s23 + $0x40] sm:$0xff] }
  0xd2   : > { %3574 = vmatpush3.bf16.msra.mxu1 %v3835_v7  ;;  %3437 = vmatprep.subr.bf16.mxu0 %v3877_v38  ;;  %v4583_v7 = vld [vmem:[%s4501_s23 + $0x98] sm:$0xff] }
  0xd3   : > { %3575 = vmatprep.subr.bf16.mxu1 %v3836_v8  ;;  %v3194_v9 = vcombine.high %v4580_v6, %v4583_v7 }
  0xd5   : > { %3438 = vmatpush3.bf16.msra.mxu0 %v3879_v39  ;;  %v1971_v39 = vunpack.c.h.bf16 %v4546_v52 }
  0xd6   : > { %3576 = vmatpush3.bf16.msra.mxu1 %v3836_v8  ;;  %3439 = vmatprep.subr.bf16.mxu0 %v3883_v45  ;;  %v3189_v8 = vcombine.low %v4568_v0, %v4571_v1 }
  0xd7   : > { %3313 = vmatprep.subr.bf16.mxu1 %v3839_v12  ;;  %v3880_v12 = vld [vmem:[%s4512_s19 + $0x78] sm:$0xff]  }
  0xd9   : > { %3578 = vmatmul.mubr.bf16.vlgmr.msra.gmra.mrb[0].mxu1 %v3838_v11  ;;  %3440 = vmatpush3.bf16.msra.mxu0 %v3884_v46  ;;  %v872_v11 = vld [vmem:[%s4501_s23 + $0x10] sm:$0xff]  ;;  %v1976_v46 = vunpack.c.l.bf16 %v878_v37 }
  0xda   : > { %3314 = vmatpush3.bf16.msra.mxu1 %v3840_v13  ;;  %3581 = vmatprep.mubr.bf16.mxu1 %v3841_v14  ;;  %v4593_v13 = vld [vmem:[%s4501_s23 + $0x20] sm:$0xff]  ;;  %v4596_v14 = vld [vmem:[%s4501_s23 + $0x30] sm:$0xff]  ;;  %v3175_v18 = vcombine.low %v870_v10, %v872_v11  ;;  %v1964_v26 = vunpack.c.l.bf16 %v872_v11  ;;  %v1965_v27 = vunpack.c.h.bf16 %v872_v11 }
  0xdb   : > { %3315 = vmatprep.subr.bf16.mxu1 %v3843_v15  ;;  %v3176_v15 = vcombine.high %v870_v10, %v872_v11  ;;  %v3180_v19 = vcombine.high %v4593_v13, %v4596_v14  ;;  %v1973_v36 = vunpack.c.h.bf16 %v4596_v14  ;;  %v884_v11 = vld [vmem:[%s4501_s23 + $0x70] sm:$0xff] }
  0xdc   : > { %1736 = vmatmul.mubr.bf16.vlgmr.msra.gmra.mrb[0].mxu0 %v3177_v51  ;;  %v1978_v51 = vunpack.c.l.bf16 %v4556_v58 }
  0xdd   : > { %1743 = vmatprep.mubr.bf16.mxu0 %v3182_v54 }
  0xde   : > { %3316 = vmatpush3.bf16.msra.mxu1 %v3844_v20  ;;  %v3193_v20 = vcombine.low %v4580_v6, %v4583_v7 }
  0xdf   : > { %3317 = vmatprep.subr.bf16.mxu1 %v3847_v22  ;;  %v1960_v22 = vunpack.c.l.bf16 %v870_v10 }
  0xe1   : > { %3582 = vmatmul.mubr.bf16.gmra.mrb[4].mxu1 %v3842_v21  ;;  %v3198_v21 = vcombine.high %v4599_v16, %v4602_v17 }
  0xe2   : > { %3585 = vmatprep.mubr.bf16.mxu1 %v3845_v23  ;;  %3318 = vmatpush3.bf16.msra.mxu1 %v3848_v24  ;;  %v1961_v23 = vunpack.c.h.bf16 %v870_v10  ;;  %v1962_v24 = vunpack.c.l.bf16 %v4536_v48  ;;  %v882_v10 = vld [vmem:[%s4501_s23 + $0x60] sm:$0xff] }
  0xe3   : > { %3319 = vmatprep.subr.bf16.mxu1 %v3851_v25  ;;  %v1963_v25 = vunpack.c.h.bf16 %v4536_v48 }
  0xe4   : > { %1744 = vmatmul.mubr.bf16.gmra.mrb[4].mxu0 %v3181_v60  ;;  %v2088_v29 = vadd.f32 %v1961_v23, %v1960_v22 }
  0xe5   : > { %1751 = vmatprep.mubr.bf16.mxu0 %v3186_v61  ;;  %v1979_v61 = vunpack.c.h.bf16 %v4556_v58  ;;  %v4642_v58 = vld [vmem:[%s4501_s23 + $0xf8] sm:$0xff] }
  0xe6   : > { %3320 = vmatpush3.bf16.msra.mxu1 %v3852_v30  ;;  %v1968_v30 = vunpack.c.l.bf16 %v4593_v13  ;;  %v2089_v38 = vadd.f32 %v2088_v29, %v1962_v24  ;;  %v1983_v24 = vunpack.c.h.bf16 %v4559_v59  ;;  %v4664_v29 = vld [vmem:[%s4501_s23 + $0x90] sm:$0xff] }
  0xe7   : > { %3321 = vmatprep.subr.bf16.mxu1 %v3857_v32  ;;  %v1970_v32 = vunpack.c.l.bf16 %v4546_v52  ;;  %v3197_v52 = vcombine.low %v4599_v16, %v4602_v17 }
  0xe8   : > { %v2090_v48 = vadd.f32 %v2089_v38, %v1963_v25  ;;  %v1989_v38 = vunpack.c.h.bf16 %v884_v11 }
  0xe9   : > { %3586 = vmatmul.mubr.bf16.gmra.mrb[8].mxu1 %v3846_v31  ;;  %v1969_v31 = vunpack.c.h.bf16 %v4593_v13 }
  0xea   : > { %3589 = vmatprep.mubr.bf16.mxu1 %v3849_v33  ;;  %3322 = vmatpush3.bf16.msra.mxu1 %v3858_v34  ;;  %v1967_v33 = vunpack.c.h.bf16 %v4539_v49  ;;  %v2093_v34 = vadd.f32 %v1965_v27, %v1964_v26  ;;  %v1984_v26 = vunpack.c.l.bf16 %v882_v10  ;;  %v1985_v27 = vunpack.c.h.bf16 %v882_v10 }
  0xeb   : > { %3323 = vmatprep.subr.bf16.mxu1 %v3865_v35  ;;  %v1972_v35 = vunpack.c.l.bf16 %v4596_v14  ;;  %2091 = vadd.xlane.f32.xlu0 %v2090_v48 }
  0xec   : > { %1752 = vmatmul.mubr.bf16.gmra.mrb[8].mxu0 %v3185_v2  ;;  %v3179_v2 = vcombine.low %v4593_v13, %v4596_v14  ;;  %v4651_v13 = vld [vmem:[%s4501_s23 + $0x108] sm:$0xff]  ;;  %v4654_v14 = vld [vmem:[%s4501_s23 + $0x118] sm:$0xff] }
  0xed   : > { %1759 = vmatprep.mubr.bf16.mxu0 %v3190_v3  ;;  %v2103_v45 = vadd.f32 %v1973_v36, %v1972_v35  ;;  %v3210_v23 = vcombine.high %v4651_v13, %v4654_v14  ;;  %v4671_v35 = vld [vmem:[%s4501_s23 + $0x138] sm:$0xff] }
  0xee   : > { %3324 = vmatpush3.bf16.msra.mxu1 %v3866_v40  ;;  %v2098_v40 = vadd.f32 %v1969_v31, %v1968_v30  ;;  %v1986_v31 = vunpack.c.l.bf16 %v4568_v0 }
  0xef   : > { %3325 = vmatprep.subr.bf16.mxu1 %v3873_v42  ;;  %v4623_v42 = vld [vmem:[%s4501_s23 + $0xc8] sm:$0xff] }
  0xf0   : > { %v2099_v49 = vadd.f32 %v2098_v40, %v1970_v32  ;;  %v2118_v32 = vadd.f32 %v1985_v27, %v1984_v26  ;;  %v2011_v26 = vunpack.c.h.bf16 %v4623_v42 }
  0xf1   : > { %3590 = vmatmul.mubr.bf16.gmra.mrb[12].mxu1 %v3850_v41  ;;  %v1974_v41 = vunpack.c.l.bf16 %v4549_v53 }
  0xf2   : > { %3593 = vmatprep.mubr.bf16.mxu1 %v3854_v43  ;;  %3326 = vmatpush3.bf16.msra.mxu1 %v3874_v44  ;;  %v4626_v43 = vld [vmem:[%s4501_s23 + $0xd8] sm:$0xff]  ;;  %v2094_v44 = vadd.f32 %v2093_v34, %v1966_v28  ;;  %v2100_v60 = vadd.f32 %v2099_v49, %v1971_v39  ;;  %v886_v28 = vld [vmem:[%s4501_s23 + $0x80] sm:$0xff]  ;;  %v4668_v34 = vld [vmem:[%s4501_s23 + $0x128] sm:$0xff]  ;;  %v2119_v36 = vadd.f32 %v2118_v32, %v1986_v31 }
  0xf3   : > { %3327 = vmatprep.subr.bf16.mxu1 %v3881_v47  ;;  %v1977_v47 = vunpack.c.h.bf16 %v878_v37  ;;  %v2104_v54 = vadd.f32 %v2103_v45, %v1974_v41  ;;  %v3192_v39 = vcombine.high %v886_v28, %v4664_v29  ;;  %v1990_v41 = vunpack.c.l.bf16 %v4571_v1 }
  0xf4   : > { %1760 = vmatmul.mubr.bf16.gmra.mrb[12].mxu0 %v3189_v8  ;;  %2101 = vadd.xlane.f32.xlu1 %v2100_v60  ;;  %v3201_v8 = vcombine.low %v4623_v42, %v4626_v43  ;;  %v3209_v45 = vcombine.low %v4651_v13, %v4654_v14  ;;  %v1992_v48 = vunpack.c.l.bf16 %v886_v28  ;;  %v1993_v49 = vunpack.c.h.bf16 %v886_v28  ;;  %v4691_v60 = vld [vmem:[%s4501_s23 + $0x158] sm:$0xff] }
  0xf5   : > { %1767 = vmatprep.mubr.bf16.mxu0 %v3194_v9 }
  0xf6   : > { %3328 = vmatpush3.bf16.msra.mxu1 %v3882_v55  ;;  %v2108_v55 = vadd.f32 %v1977_v47, %v1976_v46  ;;  %v3214_v46 = vcombine.high %v4668_v34, %v4671_v35 }
  0xf8   : > { %v2109_v53 = vadd.f32 %v2108_v55, %v1978_v51  ;;  %v4683_v51 = vld [vmem:[%s4501_s23 + $0xb0] sm:$0xff]  ;;  %v2128_v55 = vadd.f32 %v1993_v49, %v1992_v48  ;;  %v4743_v48 = vld [vmem:[%s4501_s23 + $0x120] sm:$0xff]  ;;  %v4749_v49 = vld [vmem:[%s4501_s23 + $0x198] sm:$0xff] }
  0xf9   : > { %3594 = vmatmul.mubr.bf16.gmra.mrb[16].mxu1 %v3856_v56  ;;  %v3202_v56 = vcombine.high %v4623_v42, %v4626_v43 }
  0xfa   : > { %3597 = vmatprep.mubr.bf16.mxu1 %v3862_v57  ;;  %v2095_v57 = vadd.f32 %v2094_v44, %v1967_v33  ;;  %v2110_v3 = vadd.f32 %v2109_v53, %v1979_v61  ;;  %v3187_v33 = vcombine.low %v882_v10, %v884_v11 }
  0xfc   : > { %1768 = vmatmul.mubr.bf16.gmra.mrb[16].mxu0 %v3193_v20  ;;  %2096 = vadd.xlane.f32.xlu0 %v2095_v57  ;;  %v1982_v20 = vunpack.c.l.bf16 %v4559_v59  ;;  %v1987_v59 = vunpack.c.h.bf16 %v4568_v0  ;;  %v1991_v0 = vunpack.c.h.bf16 %v4571_v1  ;;  %v4688_v57 = vld [vmem:[%s4501_s23 + $0x148] sm:$0xff]  ;;  %v1995_v1 = vunpack.c.h.bf16 %v4580_v6 }
  0xfd   : > { %1775 = vmatprep.mubr.bf16.mxu0 %v3198_v21 }
  0xfe   : > { %v2120_v40 = vadd.f32 %v2119_v36, %v1987_v59  ;;  %v4727_v36 = vld [vmem:[%s4501_s23 + $0x100] sm:$0xff] }
 0x100   : > { %2111 = vadd.xlane.f32.xlu0 %v2110_v3 }
 0x101   : > { %3598 = vmatmul.mubr.bf16.gmra.mrb[20].mxu1 %v3864_v62  ;;  %v880_v62 = vld [vmem:[%s4501_s23 + $0x50] sm:$0xff] }
 0x102   : > { %3601 = vmatprep.mubr.bf16.mxu1 %v3870_v63  ;;  %v2105_v63 = vadd.f32 %v2104_v54, %v1975_v50  ;;  %v890_v50 = vld [vmem:[%s4501_s23 + $0xa0] sm:$0xff]  ;;  %v1994_v54 = vunpack.c.l.bf16 %v4580_v6  ;;  %v3218_v6 = vcombine.high %v4688_v57, %v4691_v60 }
 0x103   : > { %v2000_v53 = vunpack.c.l.bf16 %v890_v50 }
 0x104   : > { %1776 = vmatmul.mubr.bf16.gmra.mrb[20].mxu0 %v3197_v52  ;;  %2106 = vadd.xlane.f32.xlu1 %v2105_v63  ;;  %v2129_v61 = vadd.f32 %v2128_v55, %v1994_v54  ;;  %v3196_v63 = vcombine.high %v890_v50, %v4683_v51  ;;  %v2032_v54 = vunpack.c.l.bf16 %v4743_v48  ;;  %v2033_v55 = vunpack.c.h.bf16 %v4743_v48 }
 0x105   : > { %1783 = vmatprep.mubr.bf16.mxu0 %v3202_v56  ;;  %2121 = vadd.xlane.f32.xlu0 %v2120_v40  ;;  %v3191_v56 = vcombine.low %v886_v28, %v4664_v29  ;;  %v2024_v40 = vunpack.c.l.bf16 %v4727_v36 }
 0x106   : > { %v2130_v3 = vadd.f32 %v2129_v61, %v1995_v1  ;;  %v3950_v1 = vld [vmem:[#allocation11 + $0x8] sm:$0xff]  }
 0x109   : > { %3602 = vmatmul.mubr.bf16.gmra.mrb[24].mxu1 %v3872_v4  ;;  %v3184_v4 = vcombine.high %v878_v37, %v880_v62  ;;  %2131 = vadd.xlane.f32.xlu0 %v2130_v3  ;;  %v4765_v3 = vld [vmem:[%s4501_s23 + $0x140] sm:$0xff] }
 0x10a   : > { %3605 = vmatprep.mubr.bf16.mxu1 %v3878_v5  ;;  %v4639_v5 = vld [vmem:[%s4501_s23 + $0xe8] sm:$0xff] }
 0x10b   : > { %v3206_v9 = vcombine.high %v4639_v5, %v4642_v58  ;;  %v3205_v22 = vcombine.low %v4639_v5, %v4642_v58 }
 0x10c   : > { %1784 = vmatmul.mubr.bf16.gmra.mrb[24].mxu0 %v3201_v8 }
 0x10d   : > { %1791 = vmatprep.mubr.bf16.mxu0 %v3206_v9  ;;  %v4697_v9 = vld [vmem:[%s4501_s23 + $0xc0] sm:$0xff] }
 0x111   : > { %3606 = vmatmul.mubr.bf16.gmra.mrb[28].mxu1 %v3880_v12  ;;  %v3183_v12 = vcombine.low %v878_v37, %v880_v62  ;;  %v1988_v37 = vunpack.c.l.bf16 %v884_v11 }
 0x112   : > { %1574 = vmatprep.mubr.bf16.mxu1 %v3176_v15  ;;  %v1980_v15 = vunpack.c.l.bf16 %v880_v62 }
 0x113   : > { %v2123_v44 = vadd.f32 %v1989_v38, %v1988_v37  ;;  %v2019_v38 = vunpack.c.h.bf16 %v4639_v5 }
 0x114   : > { %1792 = vmatmul.mubr.bf16.gmra.mrb[28].mxu0 %v3205_v22 }
 0x115   : > { %1799 = vmatprep.mubr.bf16.mxu0 %v3210_v23  ;;  %v2124_v47 = vadd.f32 %v2123_v44, %v1990_v41  ;;  %v3195_v23 = vcombine.low %v890_v50, %v4683_v51  ;;  %v2025_v41 = vunpack.c.h.bf16 %v4727_v36  ;;  %v4737_v44 = vld [vmem:[%s4501_s23 + $0xf0] sm:$0xff] }
 0x117   : > { %v2125_v52 = vadd.f32 %v2124_v47, %v1991_v0  ;;  %v2168_v0 = vadd.f32 %v2025_v41, %v2024_v40 }
 0x119   : > { %1575 = vmatmul.mubr.bf16.vlgmr.msra.gmra.mrb[32].mxu1 %v3175_v18  ;;  %v1981_v18 = vunpack.c.h.bf16 %v880_v62  ;;  %v2001_v62 = vunpack.c.h.bf16 %v890_v50  ;;  %v2027_v50 = vunpack.c.h.bf16 %v4651_v13 }
 0x11a   : > { %1582 = vmatprep.mubr.bf16.mxu1 %v3180_v19  ;;  %v3188_v19 = vcombine.high %v882_v10, %v884_v11  ;;  %v3213_v10 = vcombine.low %v4668_v34, %v4671_v35  ;;  %v2003_v11 = vunpack.c.h.bf16 %v4599_v16 }
 0x11b   : > { %v2113_v21 = vadd.f32 %v1981_v18, %v1980_v15  ;;  %v2138_v8 = vadd.f32 %v2001_v62, %v2000_v53  ;;  %v2008_v15 = vunpack.c.l.bf16 %v4697_v9  ;;  %v2009_v18 = vunpack.c.h.bf16 %v4697_v9 }
 0x11c   : > { %1800 = vmatmul.mubr.bf16.gmra.mrb[32].mxu0 %v3209_v45  ;;  %v2034_v53 = vunpack.c.l.bf16 %v4668_v34  ;;  %v2178_v62 = vadd.f32 %v2033_v55, %v2032_v54 }
 0x11d   : > { %v2114_v25 = vadd.f32 %v2113_v21, %v1982_v20  ;;  %1807 = vmatprep.mubr.bf16.mxu0 %v3214_v46  ;;  %v2010_v21 = vunpack.c.l.bf16 %v4623_v42  ;;  %v2148_v22 = vadd.f32 %v2009_v18, %v2008_v15  ;;  %v3217_v42 = vcombine.low %v4688_v57, %v4691_v60 }
 0x11e   : > { %v2026_v46 = vunpack.c.l.bf16 %v4651_v13  ;;  %v1998_v15 = vunpack.c.l.bf16 %v4583_v7 }
 0x11f   : > { %v2115_v30 = vadd.f32 %v2114_v25, %v1983_v24  ;;  %v4712_v24 = vld [vmem:[%s4501_s23 + $0xe0] sm:$0xff]  ;;  %v4718_v25 = vld [vmem:[%s4501_s23 + $0x178] sm:$0xff]  ;;  %v2149_v27 = vadd.f32 %v2148_v22, %v2010_v21 }
 0x120   : > { %v2016_v28 = vunpack.c.l.bf16 %v4712_v24  ;;  %v4779_v22 = vld [vmem:[%s4501_s23 + $0x160] sm:$0xff] }
 0x121   : > { %1583 = vmatmul.mubr.bf16.gmra.mrb[36].mxu1 %v3179_v2  ;;  %2116 = vadd.xlane.f32.xlu1 %v2115_v30  ;;  %v3949_v2 = vld [vmem:[#allocation11] sm:$0xff]   ;;  %v2017_v30 = vunpack.c.h.bf16 %v4712_v24  ;;  %v2150_v32 = vadd.f32 %v2149_v27, %v2011_v26  ;;  %v4785_v26 = vld [vmem:[%s4501_s23 + $0x1b8] sm:$0xff]  ;;  %v1999_v27 = vunpack.c.h.bf16 %v4583_v7  ;;  %v2006_v7 = vunpack.c.l.bf16 %v4602_v17 }
 0x122   : > { %1590 = vmatprep.mubr.bf16.mxu1 %v3184_v4  ;;  %v2002_v4 = vunpack.c.l.bf16 %v4599_v16  ;;  %3609 = vmatprep.subr.bf16.mxu0 %v3949_v2  ;;  %v4715_v16 = vld [vmem:[%s4501_s23 + $0x168] sm:$0xff] }
 0x123   : > { %3610 = vmatpush3.bf16.msra.mxu0 %v3949_v2  ;;  %v2158_v59 = vadd.f32 %v2017_v30, %v2016_v28  ;;  %v3222_v37 = vcombine.high %v4715_v16, %v4718_v25  ;;  %v4762_v2 = vld [vmem:[%s4501_s23 + $0x110] sm:$0xff]  ;;  %v2043_v30 = vunpack.c.h.bf16 %v4688_v57 }
 0x124   : > { %1808 = vmatmul.mubr.bf16.gmra.mrb[36].mxu0 %v3213_v10  ;;  %3611 = vmatprep.subr.bf16.mxu0 %v3950_v1  ;;  %v1997_v10 = vunpack.c.h.bf16 %v4664_v29  ;;  %v3208_v21 = vcombine.high %v4727_v36, %v4762_v2 }
 0x125   : > { %2126 = vadd.xlane.f32.xlu1 %v2125_v52  ;;  %1815 = vmatprep.mubr.bf16.mxu0 %v3218_v6  ;;  %v2169_v52 = vadd.f32 %v2168_v0, %v2026_v46  ;;  %v2040_v6 = vunpack.c.l.bf16 %v4765_v3  ;;  %v2007_v46 = vunpack.c.h.bf16 %v4602_v17  ;;  %v2051_v0 = vunpack.c.h.bf16 %v4715_v16 }
 0x126   : > { %v3207_v17 = vcombine.low %v4727_v36, %v4762_v2  ;;  %v2015_v36 = vunpack.c.h.bf16 %v4626_v43 }
 0x127   : > { %v2170_v61 = vadd.f32 %v2169_v52, %v2027_v50  ;;  %3612 = vmatpush3.bf16.msra.mxu0 %v3950_v1 }
 0x129   : > { %1591 = vmatmul.mubr.bf16.gmra.mrb[40].mxu1 %v3183_v12  ;;  %v2139_v12 = vadd.f32 %v2138_v8, %v2002_v4  ;;  %v2035_v4 = vunpack.c.h.bf16 %v4668_v34  ;;  %v2179_v8 = vadd.f32 %v2178_v62, %v2034_v53  ;;  %v2042_v34 = vunpack.c.l.bf16 %v4688_v57 }
 0x12a   : > { %1598 = vmatprep.mubr.bf16.mxu1 %v3188_v19  ;;  %v4707_v19 = vld [vmem:[%s4501_s23 + $0xd0] sm:$0xff]  ;;  %v2050_v57 = vunpack.c.l.bf16 %v4715_v16 }
 0x12b   : > { %v2140_v20 = vadd.f32 %v2139_v12, %v2003_v11  ;;  %v3200_v31 = vcombine.high %v4697_v9, %v4707_v19  ;;  %v3199_v47 = vcombine.low %v4697_v9, %v4707_v19  ;;  %v1996_v9 = vunpack.c.l.bf16 %v4664_v29 }
 0x12c   : > { %1816 = vmatmul.mubr.bf16.gmra.mrb[40].mxu0 %v3217_v42  ;;  %v2041_v11 = vunpack.c.h.bf16 %v4765_v3  ;;  %v2180_v12 = vadd.f32 %v2179_v8, %v2035_v4  ;;  %v2013_v50 = vunpack.c.h.bf16 %v4707_v19  ;;  %v4821_v4 = vld [vmem:[%s4501_s23 + $0x1c8] sm:$0xff]  ;;  %v4824_v8 = vld [vmem:[%s4501_s23 + $0x1d8] sm:$0xff] }
 0x12d   : > { %2141 = vadd.xlane.f32.xlu0 %v2140_v20  ;;  %1823 = vmatprep.mubr.bf16.mxu0 %v3222_v37  ;;  %v2133_v18 = vadd.f32 %v1997_v10, %v1996_v9  ;;  %v3203_v20 = vcombine.low %v4712_v24, %v4737_v44 }
 0x12e   : > { %v2188_v29 = vadd.f32 %v2041_v11, %v2040_v6  ;;  %v2020_v6 = vunpack.c.l.bf16 %v4737_v44  ;;  %v3951_v11 = vld [vmem:[#allocation11 + $0x10] sm:$0xff]  }
 0x12f   : > { %v2134_v28 = vadd.f32 %v2133_v18, %v1998_v15  ;;  %v2021_v15 = vunpack.c.h.bf16 %v4737_v44  ;;  %3613 = vmatprep.subr.bf16.mxu0 %v3951_v11 }
 0x130   : > { %3614 = vmatpush3.bf16.msra.mxu0 %v3951_v11 }
 0x131   : > { %1599 = vmatmul.mubr.bf16.gmra.mrb[44].mxu1 %v3187_v33  ;;  %v2018_v33 = vunpack.c.l.bf16 %v4639_v5  ;;  %2151 = vadd.xlane.f32.xlu0 %v2150_v32  ;;  %v4746_v5 = vld [vmem:[%s4501_s23 + $0x188] sm:$0xff]  ;;  %v2005_v32 = vunpack.c.h.bf16 %v4683_v51  ;;  %v2135_v37 = vadd.f32 %v2134_v28, %v1999_v27  ;;  %v2163_v28 = vadd.f32 %v2021_v15, %v2020_v6  ;;  %v916_v15 = vld [vmem:[%s4501_s23 + $0x170] sm:$0xff] }
 0x132   : > { %1606 = vmatprep.mubr.bf16.mxu1 %v3192_v39  ;;  %v3226_v13 = vcombine.high %v4746_v5, %v4749_v49  ;;  %v3225_v42 = vcombine.low %v4746_v5, %v4749_v49  ;;  %v2059_v10 = vunpack.c.h.bf16 %v4746_v5 }
 0x133   : > { %v2159_v39 = vadd.f32 %v2158_v59, %v2018_v33  ;;  %v2048_v33 = vunpack.c.l.bf16 %v4779_v22  ;;  %v2049_v59 = vunpack.c.h.bf16 %v4779_v22  ;;  %2136 = vadd.xlane.f32.xlu1 %v2135_v37 }
 0x135   : > { %v2160_v45 = vadd.f32 %v2159_v39, %v2019_v38  ;;  %v2198_v41 = vadd.f32 %v2049_v59, %v2048_v33  ;;  %v2028_v33 = vunpack.c.l.bf16 %v4762_v2  ;;  %v2029_v59 = vunpack.c.h.bf16 %v4762_v2 }
 0x136   : > { %v2074_v2 = vunpack.c.l.bf16 %v4821_v4 }
 0x137   : > { %2161 = vadd.xlane.f32.xlu0 %v2160_v45  ;;  %v4803_v45 = vld [vmem:[%s4501_s23 + $0x180] sm:$0xff]  ;;  %v2199_v54 = vadd.f32 %v2198_v41, %v2050_v57 }
 0x138   : > { %v2056_v55 = vunpack.c.l.bf16 %v4803_v45 }
 0x139   : > { %1607 = vmatmul.mubr.bf16.gmra.mrb[48].mxu1 %v3191_v56  ;;  %v3204_v56 = vcombine.high %v4712_v24, %v4737_v44  ;;  %v2004_v24 = vunpack.c.l.bf16 %v4683_v51  ;;  %v4800_v51 = vld [vmem:[%s4501_s23 + $0x130] sm:$0xff]  ;;  %v2200_v62 = vadd.f32 %v2199_v54, %v2051_v0  ;;  %v4857_v0 = vld [vmem:[%s4501_s23 + $0x1e8] sm:$0xff]  ;;  %v2075_v54 = vunpack.c.h.bf16 %v4821_v4 }
 0x13a   : > { %1614 = vmatprep.mubr.bf16.mxu1 %v3196_v63  ;;  %v3221_v63 = vcombine.low %v4715_v16, %v4718_v25  ;;  %v2014_v16 = vunpack.c.l.bf16 %v4626_v43  ;;  %v4839_v44 = vld [vmem:[%s4501_s23 + $0x150] sm:$0xff] }
 0x13b   : > { %2171 = vadd.xlane.f32.xlu0 %v2170_v61  ;;  %v2143_v40 = vadd.f32 %v2005_v32, %v2004_v24  ;;  %v2058_v61 = vunpack.c.l.bf16 %v4746_v5  ;;  %v2022_v5 = vunpack.c.l.bf16 %v4642_v58  ;;  %v4842_v24 = vld [vmem:[%s4501_s23 + $0x1c0] sm:$0xff]  ;;  %v2045_v6 = vunpack.c.h.bf16 %v4839_v44 }
 0x13c   : > { %1824 = vmatmul.mubr.bf16.gmra.mrb[44].mxu0 %v3221_v63  ;;  %v2073_v57 = vunpack.c.h.bf16 %v4842_v24 }
 0x13d   : > { %1831 = vmatprep.mubr.bf16.mxu0 %v3226_v13  ;;  %v2144_v52 = vadd.f32 %v2143_v40, %v2006_v7  ;;  %v4818_v13 = vld [vmem:[%s4501_s23 + $0x1a0] sm:$0xff]  ;;  %v2072_v7 = vunpack.c.l.bf16 %v4842_v24 }
 0x13e   : > { %v2064_v18 = vunpack.c.l.bf16 %v4818_v13 }
 0x13f   : > { %2181 = vadd.xlane.f32.xlu0 %v2180_v12  ;;  %v2145_v53 = vadd.f32 %v2144_v52, %v2007_v46  ;;  %v2228_v46 = vadd.f32 %v2073_v57, %v2072_v7  ;;  %v2062_v57 = vunpack.c.l.bf16 %v4749_v49 }
 0x141   : > { %1615 = vmatmul.mubr.bf16.gmra.mrb[52].mxu1 %v3195_v23  ;;  %v4782_v23 = vld [vmem:[%s4501_s23 + $0x1a8] sm:$0xff]  ;;  %2146 = vadd.xlane.f32.xlu1 %v2145_v53  ;;  %v2082_v53 = vunpack.c.l.bf16 %v4857_v0 }
 0x142   : > { %1622 = vmatprep.mubr.bf16.mxu1 %v3200_v31  ;;  %v2189_v31 = vadd.f32 %v2188_v29, %v2042_v34  ;;  %v3230_v38 = vcombine.high %v4782_v23, %v4785_v26  ;;  %v2065_v34 = vunpack.c.h.bf16 %v4818_v13  ;;  %v3229_v43 = vcombine.low %v4782_v23, %v4785_v26 }
 0x143   : > { %v3234_v29 = vcombine.high %v4821_v4, %v4824_v8  ;;  %v2067_v32 = vunpack.c.h.bf16 %v4782_v23 }
 0x144   : > { %v2190_v39 = vadd.f32 %v2189_v31, %v2043_v30  ;;  %1832 = vmatmul.mubr.bf16.gmra.mrb[48].mxu0 %v3225_v42  ;;  %v2218_v30 = vadd.f32 %v2065_v34, %v2064_v18  ;;  %v2023_v31 = vunpack.c.h.bf16 %v4642_v58  ;;  %v2164_v42 = vadd.f32 %v2163_v28, %v2022_v5 }
 0x145   : > { %1839 = vmatprep.mubr.bf16.mxu0 %v3230_v38  ;;  %v3211_v58 = vcombine.low %v4743_v48, %v4800_v51  ;;  %v2173_v38 = vadd.f32 %v2029_v59, %v2028_v33  ;;  %v2046_v18 = vunpack.c.l.bf16 %v4691_v60  ;;  %v2047_v5 = vunpack.c.h.bf16 %v4691_v60 }
 0x146   : > { %2191 = vadd.xlane.f32.xlu0 %v2190_v39  ;;  %v3216_v39 = vcombine.high %v4765_v3, %v4839_v44  ;;  %v2165_v40 = vadd.f32 %v2164_v42, %v2023_v31  ;;  %v3220_v28 = vcombine.high %v4779_v22, %v916_v15  ;;  %v2055_v60 = vunpack.c.h.bf16 %v4718_v25 }
 0x149   : > { %1623 = vmatmul.mubr.bf16.gmra.mrb[56].mxu1 %v3199_v47  ;;  %v2012_v47 = vunpack.c.l.bf16 %v4707_v19  ;;  %v3212_v19 = vcombine.high %v4743_v48, %v4800_v51  ;;  %v2031_v48 = vunpack.c.h.bf16 %v4654_v14 }
 0x14a   : > { %1630 = vmatprep.mubr.bf16.mxu1 %v3204_v56  ;;  %v2057_v56 = vunpack.c.h.bf16 %v4803_v45  ;;  %2201 = vadd.xlane.f32.xlu0 %v2200_v62 }
 0x14b   : > { %v2153_v1 = vadd.f32 %v2013_v50, %v2012_v47  ;;  %v4860_v47 = vld [vmem:[%s4501_s23 + $0x1f8] sm:$0xff]  ;;  %v4863_v50 = vld [vmem:[%s4501_s23 + $0x1e0] sm:$0xff] }
 0x14c   : > { %v2208_v63 = vadd.f32 %v2057_v56, %v2056_v55  ;;  %1840 = vmatmul.mubr.bf16.gmra.mrb[52].mxu0 %v3229_v43  ;;  %v2036_v55 = vunpack.c.l.bf16 %v4800_v51  ;;  %v2229_v56 = vadd.f32 %v2228_v46, %v2074_v2  ;;  %v3238_v62 = vcombine.high %v4857_v0, %v4860_v47  ;;  %v3953_v2 = vld [vmem:[#allocation11 + $0x20] sm:$0xff]  }
 0x14d   : > { %v2154_v9 = vadd.f32 %v2153_v1, %v2014_v16  ;;  %1847 = vmatprep.mubr.bf16.mxu0 %v3234_v29  ;;  %v2080_v16 = vunpack.c.l.bf16 %v4863_v50  ;;  %v2081_v1 = vunpack.c.h.bf16 %v4863_v50  ;;  %v3215_v43 = vcombine.low %v4765_v3, %v4839_v44  ;;  %v920_v3 = vld [vmem:[%s4501_s23 + $0x190] sm:$0xff] }
 0x14e   : > { %v2209_v12 = vadd.f32 %v2208_v63, %v2058_v61  ;;  %v3233_v61 = vcombine.low %v4821_v4, %v4824_v8  ;;  %v2230_v63 = vadd.f32 %v2229_v56, %v2075_v54  ;;  %v2044_v4 = vunpack.c.l.bf16 %v4839_v44  ;;  %v928_v54 = vld [vmem:[%s4501_s23 + $0x1d0] sm:$0xff] }
 0x14f   : > { %v2052_v29 = vunpack.c.l.bf16 %v916_v15  ;;  %v3237_v44 = vcombine.low %v4857_v0, %v4860_v47  ;;  %v2060_v42 = vunpack.c.l.bf16 %v920_v3  ;;  %v3224_v46 = vcombine.high %v4803_v45, %v920_v3 }
 0x150   : > { %v2210_v27 = vadd.f32 %v2209_v12, %v2059_v10  ;;  %v2083_v10 = vunpack.c.h.bf16 %v4857_v0  ;;  %v2193_v34 = vadd.f32 %v2045_v6, %v2044_v4  ;;  %v3956_v6 = vld [vmem:[#allocation11 + $0x38] sm:$0xff]  }
 0x151   : > { %1631 = vmatmul.mubr.bf16.gmra.mrb[60].mxu1 %v3203_v20  ;;  %v2155_v20 = vadd.f32 %v2154_v9, %v2015_v36  ;;  %v2039_v9 = vunpack.c.h.bf16 %v4671_v35 }
 0x152   : > { %1638 = vmatprep.mubr.bf16.mxu1 %v3208_v21  ;;  %v2066_v21 = vunpack.c.l.bf16 %v4782_v23  ;;  %2211 = vadd.xlane.f32.xlu0 %v2210_v27  ;;  %v2030_v23 = vunpack.c.l.bf16 %v4654_v14  ;;  %v2038_v14 = vunpack.c.l.bf16 %v4671_v35  ;;  %v2053_v27 = vunpack.c.h.bf16 %v916_v15 }
 0x153   : > { %2156 = vadd.xlane.f32.xlu1 %v2155_v20 }
 0x154   : > { %v2219_v37 = vadd.f32 %v2218_v30, %v2066_v21  ;;  %v2174_v52 = vadd.f32 %v2173_v38, %v2030_v23  ;;  %1848 = vmatmul.mubr.bf16.gmra.mrb[56].mxu0 %v3233_v61  ;;  %v2194_v21 = vadd.f32 %v2193_v34, %v2046_v18  ;;  %v3952_v30 = vld [vmem:[#allocation11 + $0x18] sm:$0xff]   ;;  %v2203_v33 = vadd.f32 %v2053_v27, %v2052_v29  ;;  %v924_v38 = vld [vmem:[%s4501_s23 + $0x1b0] sm:$0xff] }
 0x155   : > { %1855 = vmatprep.mubr.bf16.mxu0 %v3238_v62  ;;  %3615 = vmatprep.subr.bf16.mxu0 %v3952_v30  ;;  %v3219_v23 = vcombine.low %v4779_v22, %v916_v15  ;;  %v3954_v22 = vld [vmem:[#allocation11 + $0x28] sm:$0xff]   ;;  %v2079_v62 = vunpack.c.h.bf16 %v4824_v8  ;;  %v3232_v15 = vcombine.high %v4842_v24, %v928_v54  ;;  %v3231_v18 = vcombine.low %v4842_v24, %v928_v54 }
 0x156   : > { %v2220_v41 = vadd.f32 %v2219_v37, %v2067_v32  ;;  %v2195_v31 = vadd.f32 %v2194_v21, %v2047_v5  ;;  %v2054_v32 = vunpack.c.l.bf16 %v4718_v25  ;;  %3616 = vmatpush3.bf16.msra.mxu0 %v3952_v30  ;;  %v2061_v37 = vunpack.c.h.bf16 %v920_v3 }
 0x157   : > { %2166 = vadd.xlane.f32.xlu1 %v2165_v40  ;;  %v2069_v25 = vunpack.c.h.bf16 %v924_v38  ;;  %3617 = vmatprep.subr.bf16.mxu0 %v3953_v2 }
 0x158   : > { %2221 = vadd.xlane.f32.xlu0 %v2220_v41  ;;  %v2204_v59 = vadd.f32 %v2203_v33, %v2054_v32  ;;  %v2068_v41 = vunpack.c.l.bf16 %v924_v38 }
 0x159   : > { %1639 = vmatmul.mubr.bf16.gmra.mrb[64].mxu1 %v3207_v17  ;;  %v2037_v17 = vunpack.c.h.bf16 %v4800_v51  ;;  %v2238_v51 = vadd.f32 %v2081_v1, %v2080_v16  ;;  %v2078_v1 = vunpack.c.l.bf16 %v4824_v8 }
 0x15a   : > { %1646 = vmatprep.mubr.bf16.mxu1 %v3212_v19  ;;  %v2175_v19 = vadd.f32 %v2174_v52, %v2031_v48  ;;  %v2205_v7 = vadd.f32 %v2204_v59, %v2055_v60  ;;  %3618 = vmatpush3.bf16.msra.mxu0 %v3953_v2  ;;  %v2070_v48 = vunpack.c.l.bf16 %v4785_v26  ;;  %v2223_v52 = vadd.f32 %v2069_v25, %v2068_v41 }
 0x15b   : > { %v2183_v36 = vadd.f32 %v2037_v17, %v2036_v55  ;;  %v2239_v12 = vadd.f32 %v2238_v51, %v2082_v53  ;;  %v2071_v55 = vunpack.c.h.bf16 %v4785_v26  ;;  %v2077_v17 = vunpack.c.h.bf16 %v928_v54  ;;  %3619 = vmatprep.subr.bf16.mxu0 %v3954_v22  ;;  %v3955_v53 = vld [vmem:[#allocation11 + $0x30] sm:$0xff]  }
 0x15c   : > { %2176 = vadd.xlane.f32.xlu1 %v2175_v19  ;;  %2231 = vadd.xlane.f32.xlu0 %v2230_v63  ;;  %v2224_v56 = vadd.f32 %v2223_v52, %v2070_v48  ;;  %v3223_v19 = vcombine.low %v4803_v45, %v920_v3  ;;  %v3228_v51 = vcombine.high %v4818_v13, %v924_v38  ;;  %v2087_v45 = vunpack.c.h.bf16 %v4860_v47 }
 0x15d   : > { %v2184_v11 = vadd.f32 %v2183_v36, %v2038_v14  ;;  %v2240_v20 = vadd.f32 %v2239_v12, %v2083_v10  ;;  %1856 = vmatmul.mubr.bf16.gmra.mrb[60].mxu0 %v3237_v44  ;;  %v932_v14 = vld [vmem:[%s4501_s23 + $0x1f0] sm:$0xff]  ;;  %v2086_v10 = vunpack.c.l.bf16 %v4860_v47  ;;  %v3227_v12 = vcombine.low %v4818_v13, %v924_v38  ;;  %s4213_s23 = smov [#allocation14]  }
 0x15e   : > { %v2225_v16 = vadd.f32 %v2224_v56, %v2071_v55  ;;  %3620 = vmatpush3.bf16.msra.mxu0 %v3954_v22  ;;  %v2084_v36 = vunpack.c.l.bf16 %v932_v14  ;;  %v2085_v26 = vunpack.c.h.bf16 %v932_v14  ;;  %v3236_v34 = vcombine.high %v4863_v50, %v932_v14  ;;  %s4106_s11 = sshll.u32 %s4213_s23, 4  ;;  %s4107_s11 = int_to_ptr.vmem [resolvable:$false] %s4106_s11 }
 0x15f   : > { %v2185_v35 = vadd.f32 %v2184_v11, %v2039_v9  ;;  %3621 = vmatprep.subr.bf16.mxu0 %v3955_v53  ;;  %v3235_v47 = vcombine.low %v4863_v50, %v932_v14  ;;  %v4212_v59 = vmov 0   ;;  %s4108_s19 = scalar_lea.vmem %s4107_s11, 8192  ;;  %p4109_p8 = scmp.lt.s32.totalorder %s5265_s20, %s4107_s11 }
 0x160   : > { %2241 = vadd.xlane.f32.xlu0 %v2240_v20  ;;  %v2243_v4 = vadd.f32 %v2085_v26, %v2084_v36  ;;  %3828 = vset.pattern.permute.xlu1 %v4212_v59  ;;  %p4110_p12 = scmp.lt.s32.totalorder %s4108_s19, %s4102_s16 }
 0x161   : > { %1647 = vmatmul.mubr.bf16.gmra.mrb[68].mxu1 %v3211_v58  ;;  %2186 = vadd.xlane.f32.xlu1 %v2185_v35  ;;  %v2213_v58 = vadd.f32 %v2061_v37, %v2060_v42 }
 0x162   : > { %1654 = vmatprep.mubr.bf16.mxu1 %v3216_v39  ;;  %v2063_v39 = vunpack.c.h.bf16 %v4749_v49  ;;  %v2076_v49 = vunpack.c.l.bf16 %v928_v54  ;;  %3622 = vmatpush3.bf16.msra.mxu0 %v3955_v53  ;;  %v2244_v11 = vadd.f32 %v2243_v4, %v2086_v10  ;;  %p4111_p3 = por %p4110_p12, %p4109_p8 }
 0x163   : > { %v2214_v40 = vadd.f32 %v2213_v58, %v2062_v57  ;;  %3623 = vmatprep.subr.bf16.mxu0 %v3956_v6  ;;  %3827 = vset.pattern.permute.xlu0 %v4212_v59 }
 0x164   : > { %v2233_v61 = vadd.f32 %v2077_v17, %v2076_v49  ;;  %v2245_v8 = vadd.f32 %v2244_v11, %v2087_v45  ;;  %p4112_p0 = pnand %p4111_p3, %p4105_p1 }
 0x165   : > { %2196 = vadd.xlane.f32.xlu1 %v2195_v31  ;;  %v2215_v0 = vadd.f32 %v2214_v40, %v2063_v39 }
 0x166   : > { %v2234_v63 = vadd.f32 %v2233_v61, %v2078_v1  ;;  %3624 = vmatpush3.bf16.msra.mxu0 %v3956_v6 }
 0x168   : > { %v2235_v9 = vadd.f32 %v2234_v63, %v2079_v62 }
 0x169   : > { %1655 = vmatmul.mubr.bf16.gmra.mrb[72].mxu1 %v3215_v43  ;;  %2206 = vadd.xlane.f32.xlu1 %v2205_v7  ;;  %v4211_v43 = vmov 0.0  }
 0x16a   : > { %1662 = vmatprep.mubr.bf16.mxu1 %v3220_v28  ;;  %446 = vst.msk [vmem:[#allocation3] sm:$0xff] %vm445_vm0, %v4211_v43  ;;  %447 = vst.msk [vmem:[#allocation3 + $0x8] sm:$0xff] %vm445_vm0, %v4211_v43 }
 0x16b   : > { %448 = vst.msk [vmem:[#allocation3 + $0x10] sm:$0xff] %vm445_vm0, %v4211_v43  ;;  %449 = vst.msk [vmem:[#allocation3 + $0x18] sm:$0xff] %vm445_vm0, %v4211_v43 }
 0x16c   : > { %450 = vst.msk [vmem:[#allocation3 + $0x20] sm:$0xff] %vm445_vm0, %v4211_v43  ;;  %451 = vst.msk [vmem:[#allocation3 + $0x28] sm:$0xff] %vm445_vm0, %v4211_v43 }
 0x16d   : > { %2216 = vadd.xlane.f32.xlu1 %v2215_v0  ;;  %452 = vst.msk [vmem:[#allocation3 + $0x30] sm:$0xff] %vm445_vm0, %v4211_v43  ;;  %453 = vst.msk [vmem:[#allocation3 + $0x38] sm:$0xff] %vm445_vm0, %v4211_v43 }
 0x16e   : > { %454 = vst.msk [vmem:[#allocation3 + $0x40] sm:$0xff] %vm445_vm0, %v4211_v43  ;;  %455 = vst.msk [vmem:[#allocation3 + $0x48] sm:$0xff] %vm445_vm0, %v4211_v43 }
 0x16f   : > { %456 = vst.msk [vmem:[#allocation3 + $0x50] sm:$0xff] %vm445_vm0, %v4211_v43  ;;  %457 = vst.msk [vmem:[#allocation3 + $0x58] sm:$0xff] %vm445_vm0, %v4211_v43 }
 0x170   : > { %458 = vst.msk [vmem:[#allocation3 + $0x60] sm:$0xff] %vm445_vm0, %v4211_v43  ;;  %459 = vst.msk [vmem:[#allocation3 + $0x68] sm:$0xff] %vm445_vm0, %v4211_v43 }
 0x171   : > { %1663 = vmatmul.mubr.bf16.gmra.mrb[76].mxu1 %v3219_v23  ;;  %2226 = vadd.xlane.f32.xlu1 %v2225_v16  ;;  %460 = vst.msk [vmem:[#allocation3 + $0x70] sm:$0xff] %vm445_vm0, %v4211_v43  ;;  %461 = vst.msk [vmem:[#allocation3 + $0x78] sm:$0xff] %vm445_vm0, %v4211_v43  ;;  %v1928_v24 = vld [vmem:[#allocation3] sm:$0xff]  ;;  %v1929_v35 = vld [vmem:[#allocation3 + $0x8] sm:$0xff] }
 0x172   : > { %1670 = vmatprep.mubr.bf16.mxu1 %v3224_v46  ;;  %462 = vst.msk [vmem:[#allocation3 + $0x80] sm:$0xff] %vm445_vm0, %v4211_v43  ;;  %463 = vst.msk [vmem:[#allocation3 + $0x88] sm:$0xff] %vm445_vm0, %v4211_v43  ;;  %v1930_v30 = vld [vmem:[#allocation3 + $0x10] sm:$0xff]  ;;  %v1931_v3 = vld [vmem:[#allocation3 + $0x18] sm:$0xff] }
 0x173   : > { %464 = vst.msk [vmem:[#allocation3 + $0x90] sm:$0xff] %vm445_vm0, %v4211_v43  ;;  %465 = vst.msk [vmem:[#allocation3 + $0x98] sm:$0xff] %vm445_vm0, %v4211_v43  ;;  %v1932_v58 = vld [vmem:[#allocation3 + $0x20] sm:$0xff]  ;;  %v1933_v40 = vld [vmem:[#allocation3 + $0x28] sm:$0xff] }
 0x174   : > { %466 = vst.msk [vmem:[#allocation3 + $0xa0] sm:$0xff] %vm445_vm0, %v4211_v43  ;;  %467 = vst.msk [vmem:[#allocation3 + $0xa8] sm:$0xff] %vm445_vm0, %v4211_v43  ;;  %v1934_v54 = vld [vmem:[#allocation3 + $0x30] sm:$0xff]  ;;  %v1935_v17 = vld [vmem:[#allocation3 + $0x38] sm:$0xff] }
 0x175   : > { %2236 = vadd.xlane.f32.xlu1 %v2235_v9  ;;  %468 = vst.msk [vmem:[#allocation3 + $0xb0] sm:$0xff] %vm445_vm0, %v4211_v43  ;;  %469 = vst.msk [vmem:[#allocation3 + $0xb8] sm:$0xff] %vm445_vm0, %v4211_v43  ;;  %v1936_v53 = vld [vmem:[#allocation3 + $0x40] sm:$0xff] }
 0x176   : > { %470 = vst.msk [vmem:[#allocation3 + $0xc0] sm:$0xff] %vm445_vm0, %v4211_v43  ;;  %471 = vst.msk [vmem:[#allocation3 + $0xc8] sm:$0xff] %vm445_vm0, %v4211_v43  ;;  %v1938_v45 = vld [vmem:[#allocation3 + $0x50] sm:$0xff] }
 0x177   : > { %472 = vst.msk [vmem:[#allocation3 + $0xd0] sm:$0xff] %vm445_vm0, %v4211_v43  ;;  %473 = vst.msk [vmem:[#allocation3 + $0xd8] sm:$0xff] %vm445_vm0, %v4211_v43 }
 0x178   : > { %474 = vst.msk [vmem:[#allocation3 + $0xe0] sm:$0xff] %vm445_vm0, %v4211_v43  ;;  %475 = vst.msk [vmem:[#allocation3 + $0xe8] sm:$0xff] %vm445_vm0, %v4211_v43  ;;  %v2092_v13 = vpop.xlane.xlu0 %2091 }
 0x179   : > { %1671 = vmatmul.mubr.bf16.gmra.mrb[80].mxu1 %v3223_v19  ;;  %2246 = vadd.xlane.f32.xlu1 %v2245_v8  ;;  %476 = vst.msk [vmem:[#allocation3 + $0xf0] sm:$0xff] %vm445_vm0, %v4211_v43  ;;  %477 = vst.msk [vmem:[#allocation3 + $0xf8] sm:$0xff] %vm445_vm0, %v4211_v43  ;;  %v2248_v20 = vadd.f32 %v2092_v13, %v1928_v24  ;;  %v4992_v8 = vld [vmem:[%s5323_s6] ss:$0 sm:$0xff] }
 0x17a   : > { %1678 = vmatprep.mubr.bf16.mxu1 %v3228_v51 }
 0x17b   : > { %2281 = vst.msk [vmem:[#allocation3] sm:$0xff] %vm445_vm0, %v2248_v20 }
 0x181   : > { %1679 = vmatmul.mubr.bf16.gmra.mrb[84].mxu1 %v3227_v12  ;;  %v2102_v28 = vpop.xlane.xlu1 %2101 }
 0x182   : > { %1686 = vmatprep.mubr.bf16.mxu1 %v3232_v15  ;;  %v2250_v32 = vadd.f32 %v2102_v28, %v1930_v30 }
 0x184   : > { %2283 = vst.msk [vmem:[#allocation3 + $0x10] sm:$0xff] %vm445_vm0, %v2250_v32 }
 0x189   : > { %1687 = vmatmul.mubr.bf16.gmra.mrb[88].mxu1 %v3231_v18  ;;  %v2097_v50 = vpop.xlane.xlu0 %2096 }
 0x18a   : > { %1694 = vmatprep.mubr.bf16.mxu1 %v3236_v34  ;;  %v2249_v5 = vadd.f32 %v2097_v50, %v1929_v35  ;;  %v1940_v50 = vld [vmem:[#allocation3 + $0x60] sm:$0xff] }
 0x18b   : > { %v2655_v2 = vld [vmem:[#allocation3 + $0x10] sm:$0xff] }
 0x18c   : > { %2282 = vst.msk [vmem:[#allocation3 + $0x8] sm:$0xff] %vm445_vm0, %v2249_v5 }
 0x18d   : > { %v2112_v57 = vpop.xlane.xlu0 %2111 }
 0x18e   : > { %v2252_v38 = vadd.f32 %v2112_v57, %v1932_v58  ;;  %v1942_v57 = vld [vmem:[#allocation3 + $0x70] sm:$0xff]  ;;  %v2653_v58 = vld [vmem:[#allocation3] sm:$0xff] }
 0x18f   : > { %2688 = vperm.xlu0 %3827, %v2653_v58  }
 0x190   : > { %2285 = vst.msk [vmem:[#allocation3 + $0x20] sm:$0xff] %vm445_vm0, %v2252_v38 }
 0x191   : > { %1695 = vmatmul.mubr.bf16.gmra.mrb[92].mxu1 %v3235_v47  ;;  %v2107_v33 = vpop.xlane.xlu1 %2106 }
 0x192   : > { %v2251_v44 = vadd.f32 %v2107_v33, %v1931_v3  ;;  %v2122_v52 = vpop.xlane.xlu0 %2121 }
 0x193   : > { %v2654_v42 = vld [vmem:[#allocation3 + $0x8] sm:$0xff]  ;;  %v2254_v55 = vadd.f32 %v2122_v52, %v1934_v54 }
 0x194   : > { %2284 = vst.msk [vmem:[#allocation3 + $0x18] sm:$0xff] %vm445_vm0, %v2251_v44  ;;  %2693 = vperm.xlu1 %3828, %v2654_v42  }
 0x195   : > { %2287 = vst.msk [vmem:[#allocation3 + $0x30] sm:$0xff] %vm445_vm0, %v2254_v55 }
 0x196   : > { %v2132_v26 = vpop.xlane.xlu0 %2131 }
 0x197   : > { %v2657_v56 = vld [vmem:[#allocation3 + $0x20] sm:$0xff]  ;;  %v2256_v4 = vadd.f32 %v2132_v26, %v1936_v53 }
 0x198   : > { %2698 = vperm.xlu1 %3828, %v2655_v2  }
 0x199   : > { %2289 = vst.msk [vmem:[#allocation3 + $0x40] sm:$0xff] %vm445_vm0, %v2256_v4 }
 0x19b   : > { %v2656_v46 = vld [vmem:[#allocation3 + $0x18] sm:$0xff] }
 0x19c   : > { %2703 = vperm.xlu1 %3828, %v2656_v46   ;;  %v2659_v51 = vld [vmem:[#allocation3 + $0x30] sm:$0xff] }
 0x1a0   : > { %2708 = vperm.xlu1 %3828, %v2657_v56   ;;  %v2661_v42 = vld [vmem:[#allocation3 + $0x40] sm:$0xff] }
 0x1a1   : > { %v1944_v56 = vld [vmem:[#allocation3 + $0x80] sm:$0xff] }
 0x1ac   : > { %v4944_v21 = vpop.f32.mrb[0].mxu1 }
 0x1ad   : > { %v4946_v29 = vpop.f32.mrb[1].mxu1 }
 0x1ae   : > { %v4950_v27 = vpop.f32.mrb[2].mxu1  ;;  %v2117_v39 = vpop.xlane.xlu1 %2116 }
 0x1af   : > { %v4952_v31 = vpop.f32.mrb[3].mxu1  ;;  %v2253_v41 = vadd.f32 %v2117_v39, %v1933_v40  ;;  %v3441_v63 = vpop.f32.mrb[0].mxu0 }
 0x1b0   : > { %v3442_v36 = vpop.f32.mrb[1].mxu0 }
 0x1b1   : > { %2286 = vst.msk [vmem:[#allocation3 + $0x28] sm:$0xff] %vm445_vm0, %v2253_v41  ;;  %v4984_v9 = vadd.f32 %v3442_v36, %v3441_v63  ;;  %v3444_v10 = vpop.f32.mrb[2].mxu0 }
 0x1b2   : > { %v2127_v49 = vpop.xlane.xlu1 %2126  ;;  %v3445_v6 = vpop.f32.mrb[3].mxu0 }
 0x1b3   : > { %v2255_v16 = vadd.f32 %v2127_v49, %v1935_v17  ;;  %v4986_v11 = vadd.f32 %v3445_v6, %v3444_v10  ;;  %v1946_v6 = vld [vmem:[#allocation3 + $0x90] sm:$0xff] }
 0x1b4   : > { %v4955_v60 = vpop.f32.mrb[4].mxu1 }
 0x1b5   : > { %v4957_v37 = vpop.f32.mrb[5].mxu1  ;;  %2288 = vst.msk [vmem:[#allocation3 + $0x38] sm:$0xff] %vm445_vm0, %v2255_v16 }
 0x1b6   : > { %v4960_v7 = vpop.f32.mrb[6].mxu1 }
 0x1b7   : > { %v4962_v23 = vpop.f32.mrb[7].mxu1  ;;  %v3447_v5 = vpop.f32.mrb[4].mxu0 }
 0x1b8   : > { %v2658_v61 = vld [vmem:[#allocation3 + $0x28] sm:$0xff]  ;;  %v3448_v30 = vpop.f32.mrb[5].mxu0 }
 0x1b9   : > { %2713 = vperm.xlu1 %3828, %v2658_v61   ;;  %v5007_v33 = vadd.f32 %v3448_v30, %v3447_v5  ;;  %v3450_v3 = vpop.f32.mrb[6].mxu0  ;;  %v1937_v30 = vld [vmem:[#allocation3 + $0x48] sm:$0xff] }
 0x1ba   : > { %v2142_v15 = vpop.xlane.xlu0 %2141  ;;  %v3451_v59 = vpop.f32.mrb[7].mxu0 }
 0x1bb   : > { %v2258_v43 = vadd.f32 %v2142_v15, %v1938_v45  ;;  %v5009_v38 = vadd.f32 %v3451_v59, %v3450_v3 }
 0x1bc   : > { %v4965_v25 = vpop.f32.mrb[8].mxu1  ;;  %v2660_v18 = vld [vmem:[#allocation3 + $0x38] sm:$0xff] }
 0x1bd   : > { %v4967_v0 = vpop.f32.mrb[9].mxu1  ;;  %2718 = vperm.xlu1 %3828, %v2659_v51   ;;  %2291 = vst.msk [vmem:[#allocation3 + $0x50] sm:$0xff] %vm445_vm0, %v2258_v43 }
 0x1be   : > { %v4970_v48 = vpop.f32.mrb[10].mxu1  ;;  %v2152_v32 = vpop.xlane.xlu0 %2151 }
 0x1bf   : > { %v4972_v22 = vpop.f32.mrb[11].mxu1  ;;  %v2260_v44 = vadd.f32 %v2152_v32, %v1940_v50  ;;  %v3453_v16 = vpop.f32.mrb[8].mxu0  ;;  %v1948_v32 = vld [vmem:[#allocation3 + $0xa0] sm:$0xff] }
 0x1c0   : > { %v3454_v53 = vpop.f32.mrb[9].mxu0  ;;  %v2137_v5 = vpop.xlane.xlu1 %2136 }
 0x1c1   : > { %2723 = vperm.xlu1 %3828, %v2660_v18   ;;  %2293 = vst.msk [vmem:[#allocation3 + $0x60] sm:$0xff] %vm445_vm0, %v2260_v44  ;;  %v5025_v36 = vadd.f32 %v3454_v53, %v3453_v16  ;;  %v3456_v26 = vpop.f32.mrb[10].mxu0 }
 0x1c2   : > { %v3457_v10 = vpop.f32.mrb[11].mxu0 }
 0x1c3   : > { %v5027_v45 = vadd.f32 %v3457_v10, %v3456_v26 }
 0x1c4   : > { %v4975_v1 = vpop.f32.mrb[12].mxu1  ;;  %v2162_v39 = vpop.xlane.xlu0 %2161  ;;  %v2663_v55 = vld [vmem:[#allocation3 + $0x50] sm:$0xff] }
 0x1c5   : > { %v4977_v19 = vpop.f32.mrb[13].mxu1  ;;  %2728 = vperm.xlu1 %3828, %v2661_v42   ;;  %v2262_v46 = vadd.f32 %v2162_v39, %v1942_v57  ;;  %v2257_v42 = vadd.f32 %v2137_v5, %v1937_v30  ;;  %v1952_v30 = vld [vmem:[#allocation3 + $0xc0] sm:$0xff] }
 0x1c6   : > { %v4980_v14 = vpop.f32.mrb[14].mxu1 }
 0x1c7   : > { %v4982_v62 = vpop.f32.mrb[15].mxu1  ;;  %2295 = vst.msk [vmem:[#allocation3 + $0x70] sm:$0xff] %vm445_vm0, %v2262_v46  ;;  %v3459_v59 = vpop.f32.mrb[12].mxu0  ;;  %2290 = vst.msk [vmem:[#allocation3 + $0x48] sm:$0xff] %vm445_vm0, %v2257_v42 }
 0x1c8   : > { %v2172_v63 = vpop.xlane.xlu0 %2171  ;;  %v2665_v4 = vld [vmem:[#allocation3 + $0x60] sm:$0xff]  ;;  %v3460_v58 = vpop.f32.mrb[13].mxu0 }
 0x1c9   : > { %2738 = vperm.xlu1 %3828, %v2663_v55   ;;  %v2264_v51 = vadd.f32 %v2172_v63, %v1944_v56  ;;  %v5043_v39 = vadd.f32 %v3460_v58, %v3459_v59  ;;  %v1939_v56 = vld [vmem:[#allocation3 + $0x58] sm:$0xff] }
 0x1cb   : > { %2297 = vst.msk [vmem:[#allocation3 + $0x80] sm:$0xff] %vm445_vm0, %v2264_v51 }
 0x1cc   : > { %v3595_v12 = vpop.f32.mrb[16].mxu1  ;;  %v2182_v15 = vpop.xlane.xlu0 %2181 }
 0x1cd   : > { %v4995_v34 = vadd.f32 %v3595_v12, %v4992_v8  ;;  %v775_v47 = vpop.f32.mrb[17].mxu1  ;;  %2748 = vperm.xlu1 %3828, %v2665_v4   ;;  %v2266_v43 = vadd.f32 %v2182_v15, %v1946_v6 }
 0x1ce   : > { %v4998_v13 = vadd.f32 %v4992_v8, %v775_v47  ;;  %v3596_v24 = vpop.f32.mrb[18].mxu1  ;;  %v2147_v53 = vpop.xlane.xlu1 %2146  ;;  %v2662_v42 = vld [vmem:[#allocation3 + $0x48] sm:$0xff] }
 0x1cf   : > { %v5001_v35 = vadd.f32 %v3596_v24, %v4992_v8  ;;  %v778_v20 = vpop.f32.mrb[19].mxu1  ;;  %2299 = vst.msk [vmem:[#allocation3 + $0x90] sm:$0xff] %vm445_vm0, %v2266_v43  ;;  %v2259_v26 = vadd.f32 %v2147_v53, %v1939_v56  ;;  %v1941_v43 = vld [vmem:[#allocation3 + $0x68] sm:$0xff]  ;;  %2733 = vperm.xlu0 %3827, %v2662_v42  }
 0x1d0   : > { %v5005_v28 = vadd.f32 %v4992_v8, %v778_v20  ;;  %v2667_v20 = vld [vmem:[#allocation3 + $0x70] sm:$0xff] }
 0x1d1   : > { %2758 = vperm.xlu1 %3828, %v2667_v20   ;;  %2292 = vst.msk [vmem:[#allocation3 + $0x58] sm:$0xff] %vm445_vm0, %v2259_v26 }
 0x1d2   : > { %v2669_v55 = vld [vmem:[#allocation3 + $0x80] sm:$0xff] }
 0x1d4   : > { %v3599_v2 = vpop.f32.mrb[20].mxu1 }
 0x1d5   : > { %v5013_v40 = vadd.f32 %v3599_v2, %v4992_v8  ;;  %v791_v41 = vpop.f32.mrb[21].mxu1  ;;  %v2192_v2 = vpop.xlane.xlu0 %2191  ;;  %2768 = vperm.xlu1 %3828, %v2669_v55  }
 0x1d6   : > { %v5016_v52 = vadd.f32 %v4992_v8, %v791_v41  ;;  %v3600_v54 = vpop.f32.mrb[22].mxu1  ;;  %v3462_v41 = vpop.f32.mrb[14].mxu0  ;;  %v2268_v46 = vadd.f32 %v2192_v2, %v1948_v32 }
 0x1d7   : > { %v5019_v49 = vadd.f32 %v3600_v54, %v4992_v8  ;;  %v794_v17 = vpop.f32.mrb[23].mxu1  ;;  %v3463_v54 = vpop.f32.mrb[15].mxu0 }
 0x1d8   : > { %v5023_v61 = vadd.f32 %v4992_v8, %v794_v17  ;;  %v1950_v17 = vld [vmem:[#allocation3 + $0xb0] sm:$0xff]  ;;  %v5046_v16 = vadd.f32 %v3463_v54, %v3462_v41  ;;  %2301 = vst.msk [vmem:[#allocation3 + $0xa0] sm:$0xff] %vm445_vm0, %v2268_v46  ;;  %v3465_v5 = vpop.f32.mrb[16].mxu0 }
 0x1d9   : > { %v2202_v51 = vpop.xlane.xlu0 %2201 }
 0x1da   : > { %v2270_v6 = vadd.f32 %v2202_v51, %v1950_v17  ;;  %v1943_v17 = vld [vmem:[#allocation3 + $0x78] sm:$0xff] }
 0x1dc   : > { %v3603_v12 = vpop.f32.mrb[24].mxu1  ;;  %2303 = vst.msk [vmem:[#allocation3 + $0xb0] sm:$0xff] %vm445_vm0, %v2270_v6 }
 0x1dd   : > { %v5031_v18 = vadd.f32 %v3603_v12, %v4992_v8  ;;  %v807_v47 = vpop.f32.mrb[25].mxu1 }
 0x1de   : > { %v5034_v24 = vadd.f32 %v4992_v8, %v807_v47  ;;  %v3604_v50 = vpop.f32.mrb[26].mxu1  ;;  %v2671_v47 = vld [vmem:[#allocation3 + $0x90] sm:$0xff] }
 0x1df   : > { %v5037_v3 = vadd.f32 %v3604_v50, %v4992_v8  ;;  %v810_v44 = vpop.f32.mrb[27].mxu1  ;;  %2778 = vperm.xlu1 %3828, %v2671_v47   ;;  %v2212_v46 = vpop.xlane.xlu0 %2211  ;;  %v2673_v56 = vld [vmem:[#allocation3 + $0xa0] sm:$0xff]  ;;  %v2664_v47 = vld [vmem:[#allocation3 + $0x58] sm:$0xff] }
 0x1e0   : > { %v5041_v57 = vadd.f32 %v4992_v8, %v810_v44  ;;  %v3466_v44 = vpop.f32.mrb[17].mxu0  ;;  %v2157_v59 = vpop.xlane.xlu1 %2156  ;;  %v2272_v55 = vadd.f32 %v2212_v46, %v1952_v30  ;;  %2743 = vperm.xlu0 %3827, %v2664_v47  }
 0x1e1   : > { %v5063_v58 = vadd.f32 %v3466_v44, %v3465_v5  ;;  %v3468_v2 = vpop.f32.mrb[18].mxu0  ;;  %v2261_v41 = vadd.f32 %v2157_v59, %v1941_v43  ;;  %v1945_v44 = vld [vmem:[#allocation3 + $0x88] sm:$0xff] }
 0x1e2   : > { %v3469_v54 = vpop.f32.mrb[19].mxu0  ;;  %2305 = vst.msk [vmem:[#allocation3 + $0xc0] sm:$0xff] %vm445_vm0, %v2272_v55 }
 0x1e3   : > { %v5065_v53 = vadd.f32 %v3469_v54, %v3468_v2  ;;  %2294 = vst.msk [vmem:[#allocation3 + $0x68] sm:$0xff] %vm445_vm0, %v2261_v41  ;;  %2788 = vperm.xlu1 %3828, %v2673_v56   ;;  %v2675_v30 = vld [vmem:[#allocation3 + $0xb0] sm:$0xff]  ;;  %v3471_v42 = vpop.f32.mrb[20].mxu0  ;;  %v1956_v2 = vld [vmem:[#allocation3 + $0xe0] sm:$0xff] }
 0x1e4   : > { %v3607_v63 = vpop.f32.mrb[28].mxu1  ;;  %v2167_v51 = vpop.xlane.xlu1 %2166 }
 0x1e5   : > { %v5050_v10 = vadd.f32 %v3607_v63, %v4992_v8  ;;  %v823_v4 = vpop.f32.mrb[29].mxu1  ;;  %v1954_v63 = vld [vmem:[#allocation3 + $0xd0] sm:$0xff]  ;;  %v2263_v6 = vadd.f32 %v2167_v51, %v1943_v17  ;;  %v3472_v54 = vpop.f32.mrb[21].mxu0 }
 0x1e6   : > { %v5053_v12 = vadd.f32 %v4992_v8, %v823_v4  ;;  %v3608_v15 = vpop.f32.mrb[30].mxu1  ;;  %v5072_v56 = vadd.f32 %v3472_v54, %v3471_v42  ;;  %v3474_v17 = vpop.f32.mrb[22].mxu0 }
 0x1e7   : > { %v5057_v50 = vadd.f32 %v3608_v15, %v4992_v8  ;;  %v826_v20 = vpop.f32.mrb[31].mxu1  ;;  %v2222_v15 = vpop.xlane.xlu0 %2221  ;;  %2296 = vst.msk [vmem:[#allocation3 + $0x78] sm:$0xff] %vm445_vm0, %v2263_v6  ;;  %2798 = vperm.xlu1 %3828, %v2675_v30   ;;  %v1947_v6 = vld [vmem:[#allocation3 + $0x98] sm:$0xff] }
 0x1e8   : > { %v5061_v32 = vadd.f32 %v4992_v8, %v826_v20  ;;  %v2274_v5 = vadd.f32 %v2222_v15, %v1954_v63 }
 0x1e9   : > { %v2177_v55 = vpop.xlane.xlu1 %2176 }
 0x1ea   : > { %2307 = vst.msk [vmem:[#allocation3 + $0xd0] sm:$0xff] %vm445_vm0, %v2274_v5  ;;  %v2265_v63 = vadd.f32 %v2177_v55, %v1945_v44  ;;  %v2666_v47 = vld [vmem:[#allocation3 + $0x68] sm:$0xff] }
 0x1eb   : > { %2753 = vperm.xlu0 %3827, %v2666_v47  }
 0x1ec   : > { %v3329_v26 = vpop.f32.mrb[32].mxu1  ;;  %2298 = vst.msk [vmem:[#allocation3 + $0x88] sm:$0xff] %vm445_vm0, %v2265_v63 }
 0x1ed   : > { %v3330_v4 = vpop.f32.mrb[33].mxu1 }
 0x1ee   : > { %v3331_v43 = vadd.f32 %v3330_v4, %v3329_v26  ;;  %v3332_v20 = vpop.f32.mrb[34].mxu1  ;;  %v2232_v26 = vpop.xlane.xlu0 %2231  ;;  %v2668_v55 = vld [vmem:[#allocation3 + $0x78] sm:$0xff] }
 0x1ef   : > { %v3333_v59 = vpop.f32.mrb[35].mxu1  ;;  %v3475_v4 = vpop.f32.mrb[23].mxu0  ;;  %v2276_v15 = vadd.f32 %v2232_v26, %v1956_v2  ;;  %2763 = vperm.xlu0 %3827, %v2668_v55  }
 0x1f0   : > { %v1738_v41 = vadd.f32 %v4984_v9, %v3331_v43  ;;  %v3334_v46 = vadd.f32 %v3333_v59, %v3332_v20  ;;  %v5075_v30 = vadd.f32 %v3475_v4, %v3474_v17  ;;  %v2677_v9 = vld [vmem:[#allocation3 + $0xc0] sm:$0xff]  ;;  %v1958_v43 = vld [vmem:[#allocation3 + $0xf0] sm:$0xff]  ;;  %v2187_v44 = vpop.xlane.xlu1 %2186  ;;  %v1949_v17 = vld [vmem:[#allocation3 + $0xa8] sm:$0xff]  ;;  %v3477_v63 = vpop.f32.mrb[24].mxu0 }
 0x1f1   : > { %2309 = vst.msk [vmem:[#allocation3 + $0xe0] sm:$0xff] %vm445_vm0, %v2276_v15  ;;  %2808 = vperm.xlu1 %3828, %v2677_v9   ;;  %v2267_v42 = vadd.f32 %v2187_v44, %v1947_v6  ;;  %v2679_v4 = vld [vmem:[#allocation3 + $0xd0] sm:$0xff]  ;;  %v3478_v15 = vpop.f32.mrb[25].mxu0 }
 0x1f2   : > { %v1741_v51 = vadd.f32 %v4986_v11, %v3334_v46  ;;  %v2242_v11 = vpop.xlane.xlu0 %2241  ;;  %v5082_v6 = vadd.f32 %v3478_v15, %v3477_v63  ;;  %v3480_v9 = vpop.f32.mrb[26].mxu0 }
 0x1f3   : > { %v2278_v54 = vadd.f32 %v2242_v11, %v1958_v43  ;;  %2300 = vst.msk [vmem:[#allocation3 + $0x98] sm:$0xff] %vm445_vm0, %v2267_v42  ;;  %v2670_v44 = vld [vmem:[#allocation3 + $0x88] sm:$0xff] }
 0x1f4   : > { %v3335_v20 = vpop.f32.mrb[36].mxu1  ;;  %v2348_v5 = vpack.c.bf16 %v1741_v51, %v1738_v41  ;;  %v2197_v47 = vpop.xlane.xlu1 %2196  ;;  %2773 = vperm.xlu0 %3827, %v2670_v44  }
 0x1f5   : > { %v3336_v59 = vpop.f32.mrb[37].mxu1  ;;  %2311 = vst.msk [vmem:[#allocation3 + $0xf0] sm:$0xff] %vm445_vm0, %v2278_v54  ;;  %2818 = vperm.xlu1 %3828, %v2679_v4   ;;  %v2269_v43 = vadd.f32 %v2197_v47, %v1949_v17 }
 0x1f6   : > { %v3337_v46 = vadd.f32 %v3336_v59, %v3335_v20  ;;  %v3338_v2 = vpop.f32.mrb[38].mxu1  ;;  %3625 = vmatprep.mubr.bf16.mxu0 %v2348_v5  ;;  %v3481_v5 = vpop.f32.mrb[27].mxu0  ;;  %v1951_v59 = vld [vmem:[#allocation3 + $0xb8] sm:$0xff] }
 0x1f7   : > { %v3339_v26 = vpop.f32.mrb[39].mxu1  ;;  %v5085_v42 = vadd.f32 %v3481_v5, %v3480_v9  ;;  %2302 = vst.msk [vmem:[#allocation3 + $0xa8] sm:$0xff] %vm445_vm0, %v2269_v43 }
 0x1f8   : > { %v1746_v41 = vadd.f32 %v5007_v33, %v3337_v46  ;;  %v3340_v51 = vadd.f32 %v3339_v26, %v3338_v2  ;;  %v2681_v33 = vld [vmem:[#allocation3 + $0xe0] sm:$0xff]  ;;  %v2207_v2 = vpop.xlane.xlu1 %2206 }
 0x1f9   : > { %2828 = vperm.xlu1 %3828, %v2681_v33   ;;  %v2271_v55 = vadd.f32 %v2207_v2, %v1951_v59 }
 0x1fa   : > { %v1749_v20 = vadd.f32 %v5009_v38, %v3340_v51  ;;  %v2672_v17 = vld [vmem:[#allocation3 + $0x98] sm:$0xff]  ;;  %v1953_v38 = vld [vmem:[#allocation3 + $0xc8] sm:$0xff]  ;;  %v3483_v51 = vpop.f32.mrb[28].mxu0 }
 0x1fb   : > { %2304 = vst.msk [vmem:[#allocation3 + $0xb8] sm:$0xff] %vm445_vm0, %v2271_v55  ;;  %2783 = vperm.xlu0 %3827, %v2672_v17  }
 0x1fc   : > { %v2349_v11 = vpack.c.bf16 %v1749_v20, %v1746_v41  ;;  %v3341_v46 = vpop.f32.mrb[40].mxu1  ;;  %v2683_v15 = vld [vmem:[#allocation3 + $0xf0] sm:$0xff]  ;;  %v3484_v41 = vpop.f32.mrb[29].mxu0 }
 0x1fd   : > { %v3342_v54 = vpop.f32.mrb[41].mxu1  ;;  %2838 = vperm.xlu1 %3828, %v2683_v15   ;;  %v2217_v43 = vpop.xlane.xlu1 %2216  ;;  %v5090_v20 = vadd.f32 %v3484_v41, %v3483_v51 }
 0x1fe   : > { %v3343_v26 = vadd.f32 %v3342_v54, %v3341_v46  ;;  %v3344_v63 = vpop.f32.mrb[42].mxu1  ;;  %3626 = vmatmul.mubr.bf16.vlgmr.msra.gmra.mrb[64].mxu0 %v2349_v11  ;;  %v3486_v5 = vpop.f32.mrb[30].mxu0  ;;  %v2273_v44 = vadd.f32 %v2217_v43, %v1953_v38  ;;  %v2674_v11 = vld [vmem:[#allocation3 + $0xa8] sm:$0xff]  ;;  %v1955_v46 = vld [vmem:[#allocation3 + $0xd8] sm:$0xff] }
 0x1ff   : > { %v3345_v4 = vpop.f32.mrb[43].mxu1  ;;  %v3487_v33 = vpop.f32.mrb[31].mxu0  ;;  %2793 = vperm.xlu0 %3827, %v2674_v11   ;;  %v1957_v38 = vld [vmem:[#allocation3 + $0xe8] sm:$0xff] }
 0x200   : > { %v1754_v47 = vadd.f32 %v5025_v36, %v3343_v26  ;;  %v3346_v9 = vadd.f32 %v3345_v4, %v3344_v63  ;;  %v5093_v2 = vadd.f32 %v3487_v33, %v3486_v5  ;;  %2306 = vst.msk [vmem:[#allocation3 + $0xc8] sm:$0xff] %vm445_vm0, %v2273_v44 }
 0x201   : > { %v2227_v55 = vpop.xlane.xlu1 %2226 }
 0x202   : > { %v1757_v59 = vadd.f32 %v5027_v45, %v3346_v9  ;;  %v2275_v63 = vadd.f32 %v2227_v55, %v1955_v46  ;;  %v2676_v51 = vld [vmem:[#allocation3 + $0xb8] sm:$0xff]  ;;  %v3489_v45 = vpop.f32.mrb[32].mxu0 }
 0x203   : > { %2803 = vperm.xlu0 %3827, %v2676_v51   ;;  %v3490_v43 = vpop.f32.mrb[33].mxu0 }
 0x204   : > { %v3347_v54 = vpop.f32.mrb[44].mxu1  ;;  %v2350_v36 = vpack.c.bf16 %v1757_v59, %v1754_v47  ;;  %2308 = vst.msk [vmem:[#allocation3 + $0xd8] sm:$0xff] %vm445_vm0, %v2275_v63  ;;  %v5098_v44 = vadd.f32 %v3490_v43, %v3489_v45  ;;  %v3492_v47 = vpop.f32.mrb[34].mxu0 }
 0x205   : > { %v3348_v26 = vpop.f32.mrb[45].mxu1  ;;  %v2237_v5 = vpop.xlane.xlu1 %2236 }
 0x206   : > { %v3349_v17 = vadd.f32 %v3348_v26, %v3347_v54  ;;  %v3350_v4 = vpop.f32.mrb[46].mxu1  ;;  %3629 = vmatprep.mubr.bf16.mxu0 %v2350_v36  ;;  %v2277_v59 = vadd.f32 %v2237_v5, %v1957_v38  ;;  %v3493_v11 = vpop.f32.mrb[35].mxu0  ;;  %v1959_v54 = vld [vmem:[#allocation3 + $0xf8] sm:$0xff] }
 0x207   : > { %v3351_v15 = vpop.f32.mrb[47].mxu1  ;;  %v2678_v46 = vld [vmem:[#allocation3 + $0xc8] sm:$0xff]  ;;  %v5101_v36 = vadd.f32 %v3493_v11, %v3492_v47  ;;  %v3495_v45 = vpop.f32.mrb[36].mxu0 }
 0x208   : > { %v1762_v9 = vadd.f32 %v5043_v39, %v3349_v17  ;;  %v3352_v41 = vadd.f32 %v3351_v15, %v3350_v4  ;;  %2310 = vst.msk [vmem:[#allocation3 + $0xe8] sm:$0xff] %vm445_vm0, %v2277_v59  ;;  %2813 = vperm.xlu0 %3827, %v2678_v46   ;;  %v3496_v43 = vpop.f32.mrb[37].mxu0 }
 0x209   : > { %v2247_v39 = vpop.xlane.xlu1 %2246  ;;  %v5106_v5 = vadd.f32 %v3496_v43, %v3495_v45  ;;  %v3498_v47 = vpop.f32.mrb[38].mxu0 }
 0x20a   : > { %v1765_v33 = vadd.f32 %v5046_v16, %v3352_v41  ;;  %v2279_v17 = vadd.f32 %v2247_v39, %v1959_v54  ;;  %v3499_v59 = vpop.f32.mrb[39].mxu0 }
 0x20b   : > { %v2680_v15 = vld [vmem:[#allocation3 + $0xd8] sm:$0xff]  ;;  %v5109_v11 = vadd.f32 %v3499_v59, %v3498_v47 }
 0x20c   : > { %v3353_v55 = vpop.f32.mrb[48].mxu1  ;;  %v2351_v26 = vpack.c.bf16 %v1765_v33, %v1762_v9  ;;  %2312 = vst.msk [vmem:[#allocation3 + $0xf8] sm:$0xff] %vm445_vm0, %v2279_v17  ;;  %2823 = vperm.xlu0 %3827, %v2680_v15   ;;  %v3501_v17 = vpop.f32.mrb[40].mxu0 }
 0x20d   : > { %v3354_v63 = vpop.f32.mrb[49].mxu1  ;;  %v3502_v15 = vpop.f32.mrb[41].mxu0 }
 0x20e   : > { %v3355_v4 = vadd.f32 %v3354_v63, %v3353_v55  ;;  %v3356_v51 = vpop.f32.mrb[50].mxu1  ;;  %3630 = vmatmul.mubr.bf16.gmra.mrb[68].mxu0 %v2351_v26 }
 0x20f   : > { %v3357_v38 = vpop.f32.mrb[51].mxu1  ;;  %v2682_v33 = vld [vmem:[#allocation3 + $0xe8] sm:$0xff] }
 0x210   : > { %v1770_v16 = vadd.f32 %v5063_v58, %v3355_v4  ;;  %v3358_v41 = vadd.f32 %v3357_v38, %v3356_v51  ;;  %2833 = vperm.xlu0 %3827, %v2682_v33   ;;  %v3504_v38 = vpop.f32.mrb[42].mxu0 }
 0x212   : > { %v1773_v9 = vadd.f32 %v5065_v53, %v3358_v41  ;;  %v5112_v53 = vadd.f32 %v3502_v15, %v3501_v17  ;;  %v3505_v41 = vpop.f32.mrb[43].mxu0 }
 0x213   : > { %v2684_v63 = vld [vmem:[#allocation3 + $0xf8] sm:$0xff]  ;;  %v5115_v43 = vadd.f32 %v3505_v41, %v3504_v38 }
 0x214   : > { %v3359_v46 = vpop.f32.mrb[52].mxu1  ;;  %v2352_v54 = vpack.c.bf16 %v1773_v9, %v1770_v16  ;;  %2843 = vperm.xlu0 %3827, %v2684_v63  }
 0x215   : > { %v3360_v55 = vpop.f32.mrb[53].mxu1 }
 0x216   : > { %v3361_v26 = vadd.f32 %v3360_v55, %v3359_v46  ;;  %v3362_v39 = vpop.f32.mrb[54].mxu1  ;;  %3633 = vmatprep.mubr.bf16.mxu0 %v2352_v54  ;;  %v3507_v54 = vpop.f32.mrb[44].mxu0 }
 0x217   : > { %v3363_v58 = vpop.f32.mrb[55].mxu1 }
 0x218   : > { %v1778_v4 = vadd.f32 %v5072_v56, %v3361_v26  ;;  %v3364_v51 = vadd.f32 %v3363_v58, %v3362_v39  ;;  %v3508_v26 = vpop.f32.mrb[45].mxu0 }
 0x219   : > { %v5118_v39 = vadd.f32 %v3508_v26, %v3507_v54  ;;  %v3510_v63 = vpop.f32.mrb[46].mxu0 }
 0x21a   : > { %v1781_v45 = vadd.f32 %v5075_v30, %v3364_v51  ;;  %v3511_v58 = vpop.f32.mrb[47].mxu0 }
 0x21b   : > { %v5121_v17 = vadd.f32 %v3511_v58, %v3510_v63 }
 0x21c   : > { %v3365_v16 = vpop.f32.mrb[56].mxu1  ;;  %v2353_v47 = vpack.c.bf16 %v1781_v45, %v1778_v4 }
 0x21d   : > { %v3366_v9 = vpop.f32.mrb[57].mxu1 }
 0x21e   : > { %v3367_v59 = vadd.f32 %v3366_v9, %v3365_v16  ;;  %v3368_v33 = vpop.f32.mrb[58].mxu1  ;;  %3634 = vmatmul.mubr.bf16.gmra.mrb[72].mxu0 %v2353_v47  ;;  %v3513_v16 = vpop.f32.mrb[48].mxu0 }
 0x21f   : > { %v3369_v46 = vpop.f32.mrb[59].mxu1  ;;  %v3514_v9 = vpop.f32.mrb[49].mxu0 }
 0x220   : > { %v1786_v56 = vadd.f32 %v5082_v6, %v3367_v59  ;;  %v3370_v55 = vadd.f32 %v3369_v46, %v3368_v33  ;;  %v5124_v59 = vadd.f32 %v3514_v9, %v3513_v16  ;;  %v3516_v33 = vpop.f32.mrb[50].mxu0 }
 0x221   : > { %v3517_v46 = vpop.f32.mrb[51].mxu0 }
 0x222   : > { %v1789_v30 = vadd.f32 %v5085_v42, %v3370_v55  ;;  %v5127_v54 = vadd.f32 %v3517_v46, %v3516_v33 }
 0x224   : > { %v3371_v51 = vpop.f32.mrb[60].mxu1  ;;  %v2354_v4 = vpack.c.bf16 %v1789_v30, %v1786_v56 }
 0x225   : > { %v3372_v15 = vpop.f32.mrb[61].mxu1 }
 0x226   : > { %v3373_v38 = vadd.f32 %v3372_v15, %v3371_v51  ;;  %v3374_v45 = vpop.f32.mrb[62].mxu1  ;;  %3637 = vmatprep.mubr.bf16.mxu0 %v2354_v4  ;;  %v3519_v51 = vpop.f32.mrb[52].mxu0 }
 0x227   : > { %v3375_v41 = vpop.f32.mrb[63].mxu1  ;;  %v3520_v15 = vpop.f32.mrb[53].mxu0 }
 0x228   : > { %v1794_v6 = vadd.f32 %v5090_v20, %v3373_v38  ;;  %v3376_v47 = vadd.f32 %v3375_v41, %v3374_v45  ;;  %v5130_v38 = vadd.f32 %v3520_v15, %v3519_v51  ;;  %v3522_v45 = vpop.f32.mrb[54].mxu0 }
 0x229   : > { %v3523_v41 = vpop.f32.mrb[55].mxu0 }
 0x22a   : > { %v1797_v42 = vadd.f32 %v5093_v2, %v3376_v47  ;;  %v3524_v16 = vadd.f32 %v3523_v41, %v3522_v45 }
 0x22c   : > { %v3377_v55 = vpop.f32.mrb[64].mxu1  ;;  %v2355_v56 = vpack.c.bf16 %v1797_v42, %v1794_v6 }
 0x22d   : > { %v3378_v26 = vpop.f32.mrb[65].mxu1 }
 0x22e   : > { %v3379_v63 = vadd.f32 %v3378_v26, %v3377_v55  ;;  %v3380_v30 = vpop.f32.mrb[66].mxu1  ;;  %3638 = vmatmul.mubr.bf16.gmra.mrb[76].mxu0 %v2355_v56  ;;  %v3525_v55 = vpop.f32.mrb[56].mxu0 }
 0x22f   : > { %v3381_v58 = vpop.f32.mrb[67].mxu1  ;;  %v3526_v26 = vpop.f32.mrb[57].mxu0 }
 0x230   : > { %v1802_v20 = vadd.f32 %v5098_v44, %v3379_v63  ;;  %v3382_v4 = vadd.f32 %v3381_v58, %v3380_v30  ;;  %v3527_v63 = vadd.f32 %v3526_v26, %v3525_v55  ;;  %v3528_v30 = vpop.f32.mrb[58].mxu0 }
 0x231   : > { %v3529_v51 = vpop.f32.mrb[59].mxu0 }
 0x232   : > { %v1805_v2 = vadd.f32 %v5101_v36, %v3382_v4  ;;  %v3530_v36 = vadd.f32 %v3529_v51, %v3528_v30 }
 0x234   : > { %v3383_v47 = vpop.f32.mrb[68].mxu1  ;;  %v2356_v9 = vpack.c.bf16 %v1805_v2, %v1802_v20 }
 0x235   : > { %v3384_v6 = vpop.f32.mrb[69].mxu1 }
 0x236   : > { %v3385_v33 = vadd.f32 %v3384_v6, %v3383_v47  ;;  %v3386_v42 = vpop.f32.mrb[70].mxu1  ;;  %3641 = vmatprep.mubr.bf16.mxu0 %v2356_v9  ;;  %v3531_v47 = vpop.f32.mrb[60].mxu0 }
 0x237   : > { %v3387_v46 = vpop.f32.mrb[71].mxu1 }
 0x238   : > { %v1810_v56 = vadd.f32 %v5106_v5, %v3385_v33  ;;  %v3388_v44 = vadd.f32 %v3387_v46, %v3386_v42  ;;  %v3532_v5 = vpop.f32.mrb[61].mxu0 }
 0x239   : > { %v3533_v33 = vadd.f32 %v3532_v5, %v3531_v47  ;;  %v3534_v42 = vpop.f32.mrb[62].mxu0 }
 0x23a   : > { %v1813_v58 = vadd.f32 %v5109_v11, %v3388_v44  ;;  %v3535_v55 = vpop.f32.mrb[63].mxu0 }
 0x23b   : > { %v3536_v11 = vadd.f32 %v3535_v55, %v3534_v42 }
 0x23c   : > { %v3389_v4 = vpop.f32.mrb[72].mxu1  ;;  %v2357_v15 = vpack.c.bf16 %v1813_v58, %v1810_v56 }
 0x23d   : > { %v3390_v45 = vpop.f32.mrb[73].mxu1 }
 0x23e   : > { %v3391_v20 = vadd.f32 %v3390_v45, %v3389_v4  ;;  %v3392_v2 = vpop.f32.mrb[74].mxu1  ;;  %3642 = vmatmul.mubr.bf16.gmra.mrb[80].mxu0 %v2357_v15 }
 0x23f   : > { %v3393_v41 = vpop.f32.mrb[75].mxu1 }
 0x240   : > { %v1818_v9 = vadd.f32 %v5112_v53, %v3391_v20  ;;  %v3394_v6 = vadd.f32 %v3393_v41, %v3392_v2 }
 0x242   : > { %v1821_v46 = vadd.f32 %v5115_v43, %v3394_v6 }
 0x244   : > { %v3395_v44 = vpop.f32.mrb[76].mxu1  ;;  %v2358_v26 = vpack.c.bf16 %v1821_v46, %v1818_v9 }
 0x245   : > { %v3396_v30 = vpop.f32.mrb[77].mxu1 }
 0x246   : > { %v3397_v56 = vadd.f32 %v3396_v30, %v3395_v44  ;;  %v3398_v58 = vpop.f32.mrb[78].mxu1  ;;  %3645 = vmatprep.mubr.bf16.mxu0 %v2358_v26 }
 0x247   : > { %v3399_v51 = vpop.f32.mrb[79].mxu1 }
 0x248   : > { %v1826_v4 = vadd.f32 %v5118_v39, %v3397_v56  ;;  %v3400_v15 = vadd.f32 %v3399_v51, %v3398_v58 }
 0x24a   : > { %v1829_v53 = vadd.f32 %v5121_v17, %v3400_v15 }
 0x24c   : > { %v3401_v45 = vpop.f32.mrb[80].mxu1  ;;  %v2359_v20 = vpack.c.bf16 %v1829_v53, %v1826_v4 }
 0x24d   : > { %v3402_v2 = vpop.f32.mrb[81].mxu1 }
 0x24e   : > { %v3403_v41 = vadd.f32 %v3402_v2, %v3401_v45  ;;  %v3404_v47 = vpop.f32.mrb[82].mxu1  ;;  %3646 = vmatmul.mubr.bf16.gmra.mrb[84].mxu0 %v2359_v20 }
 0x24f   : > { %v3405_v43 = vpop.f32.mrb[83].mxu1 }
 0x250   : > { %v1834_v6 = vadd.f32 %v5124_v59, %v3403_v41  ;;  %v3406_v9 = vadd.f32 %v3405_v43, %v3404_v47 }
 0x252   : > { %v1837_v5 = vadd.f32 %v5127_v54, %v3406_v9 }
 0x254   : > { %v3407_v42 = vpop.f32.mrb[84].mxu1  ;;  %v2360_v46 = vpack.c.bf16 %v1837_v5, %v1834_v6 }
 0x255   : > { %v3408_v55 = vpop.f32.mrb[85].mxu1 }
 0x256   : > { %v3409_v44 = vadd.f32 %v3408_v55, %v3407_v42  ;;  %v3410_v39 = vpop.f32.mrb[86].mxu1  ;;  %3649 = vmatprep.mubr.bf16.mxu0 %v2360_v46  ;;  %v2694_v46 = vpop.permute.xlu1 %2693 }
 0x257   : > { %v3411_v26 = vpop.f32.mrb[87].mxu1 }
 0x258   : > { %v1842_v17 = vadd.f32 %v5130_v38, %v3409_v44  ;;  %v3412_v30 = vadd.f32 %v3411_v26, %v3410_v39  ;;  %v720_v26 = vadd.f32 %v4944_v21, %v4992_v8 }
 0x25a   : > { %v1845_v56 = vadd.f32 %v3524_v16, %v3412_v30  ;;  %v2699_v55 = vpop.permute.xlu1 %2698 }
 0x25c   : > { %v3413_v58 = vpop.f32.mrb[88].mxu1  ;;  %v2361_v51 = vpack.c.bf16 %v1845_v56, %v1842_v17  ;;  %v723_v56 = vadd.f32 %v4950_v27, %v4992_v8 }
 0x25d   : > { %v3414_v4 = vpop.f32.mrb[89].mxu1 }
 0x25e   : > { %v3415_v15 = vadd.f32 %v3414_v4, %v3413_v58  ;;  %v3416_v53 = vpop.f32.mrb[90].mxu1  ;;  %3650 = vmatmul.mubr.bf16.gmra.mrb[88].mxu0 %v2361_v51  ;;  %v2704_v44 = vpop.permute.xlu1 %2703 }
 0x25f   : > { %v3417_v59 = vpop.f32.mrb[91].mxu1 }
 0x260   : > { %v1850_v45 = vadd.f32 %v3527_v63, %v3415_v15  ;;  %v3418_v54 = vadd.f32 %v3417_v59, %v3416_v53  ;;  %v5145_v63 = vld [vmem:[%s5321_s4] ss:$0 sm:$0xff]  ;;  %v715_v15 = vadd.f32 %v4992_v8, %v4952_v31 }
 0x261   : > { %v2855_v58 = vmul.f32 %v5145_v63, %v2704_v44  ;;  %v2853_v21 = vmul.f32 %v5145_v63, %v2694_v46 }
 0x262   : > { %v1853_v20 = vadd.f32 %v3530_v36, %v3418_v54  ;;  %v2689_v36 = vpop.permute.xlu0 %2688  ;;  %v2709_v39 = vpop.permute.xlu1 %2708 }
 0x263   : > { %v2852_v30 = vmul.f32 %v5145_v63, %v2689_v36  ;;  %v2856_v46 = vmul.f32 %v5145_v63, %v2709_v39  ;;  %v739_v36 = vadd.f32 %v4960_v7, %v4992_v8 }
 0x264   : > { %v3419_v2 = vpop.f32.mrb[92].mxu1  ;;  %v2362_v41 = vpack.c.bf16 %v1853_v20, %v1850_v45 }
 0x265   : > { %v3420_v47 = vpop.f32.mrb[93].mxu1 }
 0x266   : > { %v3421_v43 = vadd.f32 %v3420_v47, %v3419_v2  ;;  %v3422_v6 = vpop.f32.mrb[94].mxu1  ;;  %3653 = vmatprep.mubr.bf16.mxu0 %v2362_v41  ;;  %v2714_v20 = vpop.permute.xlu1 %2713 }
 0x267   : > { %v3423_v9 = vpop.f32.mrb[95].mxu1 }
 0x268   : > { %v1858_v38 = vadd.f32 %v3533_v33, %v3421_v43  ;;  %v3424_v5 = vadd.f32 %v3423_v9, %v3422_v6  ;;  %v2854_v33 = vmul.f32 %v5145_v63, %v2699_v55 }
 0x26a   : > { %v1861_v16 = vadd.f32 %v3536_v11, %v3424_v5  ;;  %v712_v11 = vadd.f32 %v4992_v8, %v4946_v29  ;;  %v736_v5 = vadd.f32 %v4955_v60, %v4992_v8  ;;  %v731_v60 = vadd.f32 %v4992_v8, %v4962_v23 }
 0x26c   : > { %v2363_v42 = vpack.c.bf16 %v1861_v16, %v1858_v38  ;;  %v2719_v38 = vpop.permute.xlu1 %2718 }
 0x26d   : > { %v2858_v16 = vmul.f32 %v5145_v63, %v2719_v38 }
 0x26e   : > { %3654 = vmatmul.mubr.bf16.gmra.mrb[92].mxu0 %v2363_v42  ;;  %v728_v42 = vadd.f32 %v4992_v8, %v4957_v37 }
 0x270   : > { %v2724_v55 = vpop.permute.xlu1 %2723 }
 0x2d1   : > { %v3627_v17 = vpop.f32.mrb[64].mxu0 }
 0x2d2   : > { %v2623_v51 = vadd.f32 %v3627_v17, %v720_v26  ;;  %v2462_v4 = vpop.f32.mrb[65].mxu0  ;;  %v2859_v26 = vmul.f32 %v5145_v63, %v2724_v55  ;;  %v2857_v17 = vmul.f32 %v5145_v63, %v2714_v20  ;;  %v752_v20 = vadd.f32 %v4965_v25, %v4992_v8 }
 0x2d3   : > { %v2621_v53 = vadd.f32 %v2462_v4, %v712_v11  ;;  %v3628_v59 = vpop.f32.mrb[66].mxu0  ;;  %v747_v25 = vadd.f32 %v4992_v8, %v4972_v22 }
 0x2d4   : > { %v2886_v45 = vadd.f32 %v2854_v33, %v2623_v51  ;;  %v2624_v29 = vadd.f32 %v3628_v59, %v723_v56  ;;  %v2465_v54 = vpop.f32.mrb[67].mxu0 }
 0x2d5   : > { %v2884_v2 = vadd.f32 %v2852_v30, %v2621_v53  ;;  %v2622_v41 = vadd.f32 %v2465_v54, %v715_v15 }
 0x2d6   : > { %v2918_v47 = vmax.f32 %v2886_v45, 0.0  ;;  %v2887_v27 = vadd.f32 %v2855_v58, %v2624_v29  ;;  %v2729_v45 = vpop.permute.xlu1 %2728  ;;  %v2734_v29 = vpop.permute.xlu0 %2733 }
 0x2d7   : > { %v2916_v43 = vmax.f32 %v2884_v2, 0.0  ;;  %v2885_v6 = vadd.f32 %v2853_v21, %v2622_v41  ;;  %v744_v41 = vadd.f32 %v4992_v8, %v4967_v0 }
 0x2d8   : > { %2950 = vst [vmem:[%s5160_s24 + $0x10] sm:$0xff] %v2918_v47  ;;  %v2919_v31 = vmax.f32 %v2887_v27, 0.0  ;;  %v2860_v47 = vmul.f32 %v5145_v63, %v2729_v45 }
 0x2d9   : > { %2948 = vst [vmem:[%s5160_s24] sm:$0xff] %v2916_v43  ;;  %v2917_v9 = vmax.f32 %v2885_v6, 0.0  ;;  %v755_v6 = vadd.f32 %v4970_v48, %v4992_v8 }
 0x2da   : > { %2951 = vst [vmem:[%s5160_s24 + $0x18] sm:$0xff] %v2919_v31  ;;  %v2739_v54 = vpop.permute.xlu1 %2738  ;;  %v2744_v27 = vpop.permute.xlu0 %2743 }
 0x2db   : > { %2949 = vst [vmem:[%s5160_s24 + $0x8] sm:$0xff] %v2917_v9  ;;  %v2862_v2 = vmul.f32 %v5145_v63, %v2739_v54  ;;  %v2863_v31 = vmul.f32 %v5145_v63, %v2744_v27 }
 0x2de   : > { %v2749_v22 = vpop.permute.xlu1 %2748  ;;  %v2754_v8 = vpop.permute.xlu0 %2753 }
 0x2df   : > { %v2864_v45 = vmul.f32 %v5145_v63, %v2749_v22 }
 0x2e1   : > { %v3631_v44 = vpop.f32.mrb[68].mxu0 }
 0x2e2   : > { %v2627_v33 = vadd.f32 %v3631_v44, %v736_v5  ;;  %v2478_v11 = vpop.f32.mrb[69].mxu0  ;;  %v2861_v5 = vmul.f32 %v5145_v63, %v2734_v29 }
 0x2e3   : > { %v2625_v30 = vadd.f32 %v2478_v11, %v728_v42  ;;  %v3632_v37 = vpop.f32.mrb[70].mxu0 }
 0x2e4   : > { %v2890_v39 = vadd.f32 %v2858_v16, %v2627_v33  ;;  %v2628_v56 = vadd.f32 %v3632_v37, %v739_v36  ;;  %v2481_v58 = vpop.f32.mrb[71].mxu0 }
 0x2e5   : > { %v2888_v51 = vadd.f32 %v2856_v46, %v2625_v30  ;;  %v2626_v7 = vadd.f32 %v2481_v58, %v731_v60  ;;  %v3957_v30 = vld [vmem:[%s5323_s6] ss:$0 sm:$0xff]  ;;  %v2764_v58 = vpop.permute.xlu0 %2763 }
 0x2e6   : > { %v2922_v4 = vmax.f32 %v2890_v39, 0.0  ;;  %v2891_v15 = vadd.f32 %v2859_v26, %v2628_v56  ;;  %v768_v37 = vadd.f32 %v3957_v30, %v4975_v1  ;;  %v2759_v39 = vpop.permute.xlu1 %2758  ;;  %v760_v56 = vadd.f32 %v3957_v30, %v4977_v19 }
 0x2e7   : > { %v2920_v21 = vmax.f32 %v2888_v51, 0.0  ;;  %v2889_v53 = vadd.f32 %v2857_v17, %v2626_v7  ;;  %v771_v7 = vadd.f32 %v3957_v30, %v4980_v14  ;;  %v2865_v1 = vmul.f32 %v5145_v63, %v2754_v8 }
 0x2e8   : > { %2954 = vst [vmem:[%s5160_s24 + $0x30] sm:$0xff] %v2922_v4  ;;  %v2923_v59 = vmax.f32 %v2891_v15, 0.0  ;;  %v2866_v4 = vmul.f32 %v5145_v63, %v2759_v39  ;;  %v2867_v15 = vmul.f32 %v5145_v63, %v2764_v58 }
 0x2e9   : > { %2952 = vst [vmem:[%s5160_s24 + $0x20] sm:$0xff] %v2920_v21  ;;  %v2921_v23 = vmax.f32 %v2889_v53, 0.0 }
 0x2ea   : > { %2955 = vst [vmem:[%s5160_s24 + $0x38] sm:$0xff] %v2923_v59  ;;  %v763_v59 = vadd.f32 %v3957_v30, %v4982_v62 }
 0x2eb   : > { %2953 = vst [vmem:[%s5160_s24 + $0x28] sm:$0xff] %v2921_v23 }
 0x2f1   : > { %v3635_v43 = vpop.f32.mrb[72].mxu0 }
 0x2f2   : > { %v2631_v9 = vadd.f32 %v3635_v43, %v752_v20  ;;  %v2494_v38 = vpop.f32.mrb[73].mxu0 }
 0x2f3   : > { %v2629_v16 = vadd.f32 %v2494_v38, %v744_v41  ;;  %v3636_v0 = vpop.f32.mrb[74].mxu0 }
 0x2f4   : > { %v2894_v42 = vadd.f32 %v2862_v2, %v2631_v9  ;;  %v2632_v46 = vadd.f32 %v3636_v0, %v755_v6  ;;  %v2497_v55 = vpop.f32.mrb[75].mxu0  ;;  %v2774_v9 = vpop.permute.xlu0 %2773 }
 0x2f5   : > { %v2892_v44 = vadd.f32 %v2860_v47, %v2629_v16  ;;  %v2630_v48 = vadd.f32 %v2497_v55, %v747_v25 }
 0x2f6   : > { %v2926_v36 = vmax.f32 %v2894_v42, 0.0  ;;  %v2895_v26 = vadd.f32 %v2863_v31, %v2632_v46  ;;  %v2769_v31 = vpop.permute.xlu1 %2768 }
 0x2f7   : > { %v2924_v33 = vmax.f32 %v2892_v44, 0.0  ;;  %v2893_v11 = vadd.f32 %v2861_v5, %v2630_v48  ;;  %v2868_v55 = vmul.f32 %v5145_v63, %v2769_v31  ;;  %v2869_v44 = vmul.f32 %v5145_v63, %v2774_v9 }
 0x2f8   : > { %2958 = vst [vmem:[%s5160_s24 + $0x50] sm:$0xff] %v2926_v36  ;;  %v2927_v60 = vmax.f32 %v2895_v26, 0.0  ;;  %v2784_v25 = vpop.permute.xlu0 %2783 }
 0x2f9   : > { %2956 = vst [vmem:[%s5160_s24 + $0x40] sm:$0xff] %v2924_v33  ;;  %v2925_v17 = vmax.f32 %v2893_v11, 0.0  ;;  %v2871_v0 = vmul.f32 %v5145_v63, %v2784_v25 }
 0x2fa   : > { %2959 = vst [vmem:[%s5160_s24 + $0x58] sm:$0xff] %v2927_v60  ;;  %v2779_v38 = vpop.permute.xlu1 %2778 }
 0x2fb   : > { %2957 = vst [vmem:[%s5160_s24 + $0x48] sm:$0xff] %v2925_v17  ;;  %v2870_v16 = vmul.f32 %v5145_v63, %v2779_v38 }
 0x301   : > { %v3639_v51 = vpop.f32.mrb[76].mxu0 }
 0x302   : > { %v2635_v21 = vadd.f32 %v3639_v51, %v768_v37  ;;  %v2510_v53 = vpop.f32.mrb[77].mxu0 }
 0x303   : > { %v2633_v23 = vadd.f32 %v2510_v53, %v760_v56  ;;  %v3640_v19 = vpop.f32.mrb[78].mxu0  ;;  %v2789_v56 = vpop.permute.xlu1 %2788 }
 0x304   : > { %v2898_v29 = vadd.f32 %v2866_v4, %v2635_v21  ;;  %v2636_v14 = vadd.f32 %v3640_v19, %v771_v7  ;;  %v2513_v54 = vpop.f32.mrb[79].mxu0 }
 0x305   : > { %v2896_v20 = vadd.f32 %v2864_v45, %v2633_v23  ;;  %v2634_v2 = vadd.f32 %v2513_v54, %v763_v59 }
 0x306   : > { %v2930_v41 = vmax.f32 %v2898_v29, 0.0  ;;  %v2899_v47 = vadd.f32 %v2867_v15, %v2636_v14 }
 0x307   : > { %v2928_v27 = vmax.f32 %v2896_v20, 0.0  ;;  %v2897_v43 = vadd.f32 %v2865_v1, %v2634_v2  ;;  %v2799_v58 = vpop.permute.xlu1 %2798 }
 0x308   : > { %2962 = vst [vmem:[%s5160_s24 + $0x70] sm:$0xff] %v2930_v41  ;;  %v2931_v62 = vmax.f32 %v2899_v47, 0.0 }
 0x309   : > { %2960 = vst [vmem:[%s5160_s24 + $0x60] sm:$0xff] %v2928_v27  ;;  %v2929_v6 = vmax.f32 %v2897_v43, 0.0 }
 0x30a   : > { %2963 = vst [vmem:[%s5160_s24 + $0x78] sm:$0xff] %v2931_v62 }
 0x30b   : > { %2961 = vst [vmem:[%s5160_s24 + $0x68] sm:$0xff] %v2929_v6  ;;  %v2809_v47 = vpop.permute.xlu1 %2808 }
 0x30f   : > { %v2819_v43 = vpop.permute.xlu1 %2818 }
 0x310   : > { %v2878_v62 = vmul.f32 %v5145_v63, %v2819_v43 }
 0x311   : > { %v3643_v5 = vpop.f32.mrb[80].mxu0 }
 0x312   : > { %v2639_v42 = vadd.f32 %v3643_v5, %v4995_v34  ;;  %v2526_v46 = vpop.f32.mrb[81].mxu0 }
 0x313   : > { %v2637_v48 = vadd.f32 %v2526_v46, %v4998_v13  ;;  %v3644_v36 = vpop.f32.mrb[82].mxu0  ;;  %v2794_v13 = vpop.permute.xlu0 %2793 }
 0x314   : > { %v2902_v26 = vadd.f32 %v2870_v16, %v2639_v42  ;;  %v2640_v33 = vadd.f32 %v3644_v36, %v5001_v35  ;;  %v2529_v11 = vpop.f32.mrb[83].mxu0  ;;  %v2874_v35 = vmul.f32 %v5145_v63, %v2799_v58  ;;  %v2873_v19 = vmul.f32 %v5145_v63, %v2794_v13 }
 0x315   : > { %v2900_v60 = vadd.f32 %v2868_v55, %v2637_v48  ;;  %v2638_v17 = vadd.f32 %v2529_v11, %v5005_v28  ;;  %v2872_v28 = vmul.f32 %v5145_v63, %v2789_v56 }
 0x316   : > { %v2934_v22 = vmax.f32 %v2902_v26, 0.0  ;;  %v2903_v34 = vadd.f32 %v2871_v0, %v2640_v33  ;;  %v2829_v33 = vpop.permute.xlu1 %2828 }
 0x317   : > { %v2932_v8 = vmax.f32 %v2900_v60, 0.0  ;;  %v2901_v30 = vadd.f32 %v2869_v44, %v2638_v17  ;;  %v2804_v15 = vpop.permute.xlu0 %2803 }
 0x318   : > { %2966 = vst [vmem:[%s5160_s24 + $0x90] sm:$0xff] %v2934_v22  ;;  %v2935_v37 = vmax.f32 %v2903_v34, 0.0  ;;  %v2875_v59 = vmul.f32 %v5145_v63, %v2804_v15 }
 0x319   : > { %2964 = vst [vmem:[%s5160_s24 + $0x80] sm:$0xff] %v2932_v8  ;;  %v2933_v39 = vmax.f32 %v2901_v30, 0.0  ;;  %v2880_v30 = vmul.f32 %v5145_v63, %v2829_v33 }
 0x31a   : > { %2967 = vst [vmem:[%s5160_s24 + $0x98] sm:$0xff] %v2935_v37 }
 0x31b   : > { %2965 = vst [vmem:[%s5160_s24 + $0x88] sm:$0xff] %v2933_v39  ;;  %v2814_v27 = vpop.permute.xlu0 %2813 }
 0x31c   : > { %v2877_v46 = vmul.f32 %v5145_v63, %v2814_v27 }
 0x31f   : > { %v2824_v9 = vpop.permute.xlu0 %2823 }
 0x320   : > { %v2879_v5 = vmul.f32 %v5145_v63, %v2824_v9 }
 0x321   : > { %v3647_v51 = vpop.f32.mrb[84].mxu0 }
 0x322   : > { %v2643_v7 = vadd.f32 %v3647_v51, %v5013_v40  ;;  %v2542_v4 = vpop.f32.mrb[85].mxu0 }
 0x323   : > { %v2641_v21 = vadd.f32 %v2542_v4, %v5016_v52  ;;  %v3648_v53 = vpop.f32.mrb[86].mxu0  ;;  %v2834_v60 = vpop.permute.xlu0 %2833 }
 0x324   : > { %v2906_v45 = vadd.f32 %v2874_v35, %v2643_v7  ;;  %v2644_v1 = vadd.f32 %v3648_v53, %v5019_v49  ;;  %v2545_v23 = vpop.f32.mrb[87].mxu0  ;;  %v2881_v35 = vmul.f32 %v5145_v63, %v2834_v60 }
 0x325   : > { %v2904_v40 = vadd.f32 %v2872_v28, %v2641_v21  ;;  %v2642_v29 = vadd.f32 %v2545_v23, %v5023_v61  ;;  %v2876_v61 = vmul.f32 %v5145_v63, %v2809_v47 }
 0x326   : > { %v2938_v14 = vmax.f32 %v2906_v45, 0.0  ;;  %v2907_v54 = vadd.f32 %v2875_v59, %v2644_v1 }
 0x327   : > { %v2936_v20 = vmax.f32 %v2904_v40, 0.0  ;;  %v2905_v2 = vadd.f32 %v2873_v19, %v2642_v29  ;;  %v2844_v17 = vpop.permute.xlu0 %2843 }
 0x328   : > { %2970 = vst [vmem:[%s5160_s24 + $0xb0] sm:$0xff] %v2938_v14  ;;  %v2939_v52 = vmax.f32 %v2907_v54, 0.0  ;;  %v2883_v56 = vmul.f32 %v5145_v63, %v2844_v17 }
 0x329   : > { %2968 = vst [vmem:[%s5160_s24 + $0xa0] sm:$0xff] %v2936_v20  ;;  %v2937_v41 = vmax.f32 %v2905_v2, 0.0 }
 0x32a   : > { %2971 = vst [vmem:[%s5160_s24 + $0xb8] sm:$0xff] %v2939_v52 }
 0x32b   : > { %2969 = vst [vmem:[%s5160_s24 + $0xa8] sm:$0xff] %v2937_v41 }
 0x331   : > { %v3651_v49 = vpop.f32.mrb[88].mxu0 }
 0x332   : > { %v2647_v6 = vadd.f32 %v3651_v49, %v5031_v18  ;;  %v2558_v31 = vpop.f32.mrb[89].mxu0 }
 0x333   : > { %v2645_v38 = vadd.f32 %v2558_v31, %v5034_v24  ;;  %v3652_v25 = vpop.f32.mrb[90].mxu0 }
 0x334   : > { %v2910_v16 = vadd.f32 %v2878_v62, %v2647_v6  ;;  %v2648_v0 = vadd.f32 %v3652_v25, %v5037_v3  ;;  %v2561_v42 = vpop.f32.mrb[91].mxu0  ;;  %v2839_v3 = vpop.permute.xlu1 %2838 }
 0x335   : > { %v2908_v18 = vadd.f32 %v2876_v61, %v2645_v38  ;;  %v2646_v55 = vadd.f32 %v2561_v42, %v5041_v57  ;;  %v2882_v34 = vmul.f32 %v5145_v63, %v2839_v3 }
 0x336   : > { %v2942_v44 = vmax.f32 %v2910_v16, 0.0  ;;  %v2911_v48 = vadd.f32 %v2879_v5, %v2648_v0 }
 0x337   : > { %v2940_v36 = vmax.f32 %v2908_v18, 0.0  ;;  %v2909_v26 = vadd.f32 %v2877_v46, %v2646_v55 }
 0x338   : > { %2974 = vst [vmem:[%s5160_s24 + $0xd0] sm:$0xff] %v2942_v44  ;;  %v2943_v24 = vmax.f32 %v2911_v48, 0.0 }
 0x339   : > { %2972 = vst [vmem:[%s5160_s24 + $0xc0] sm:$0xff] %v2940_v36  ;;  %v2941_v11 = vmax.f32 %v2909_v26, 0.0 }
 0x33a   : > { %2975 = vst [vmem:[%s5160_s24 + $0xd8] sm:$0xff] %v2943_v24 }
 0x33b   : > { %2973 = vst [vmem:[%s5160_s24 + $0xc8] sm:$0xff] %v2941_v11 }
 0x341   : > { %v3655_v22 = vpop.f32.mrb[92].mxu0 }
 0x342   : > { %v2651_v57 = vadd.f32 %v3655_v22, %v5050_v10  ;;  %v2574_v8 = vpop.f32.mrb[93].mxu0 }
 0x343   : > { %v2649_v37 = vadd.f32 %v2574_v8, %v5053_v12  ;;  %v3656_v39 = vpop.f32.mrb[94].mxu0 }
 0x344   : > { %v2914_v13 = vadd.f32 %v2882_v34, %v2651_v57  ;;  %v2652_v58 = vadd.f32 %v3656_v39, %v5057_v50  ;;  %v2577_v51 = vpop.f32.mrb[95].mxu0 }
 0x345   : > { %v2912_v7 = vadd.f32 %v2880_v30, %v2649_v37  ;;  %v2650_v10 = vadd.f32 %v2577_v51, %v5061_v32 }
 0x346   : > { %v2946_v12 = vmax.f32 %v2914_v13, 0.0  ;;  %v2915_v4 = vadd.f32 %v2883_v56, %v2652_v58 }
 0x347   : > { %v2944_v28 = vmax.f32 %v2912_v7, 0.0  ;;  %v2913_v15 = vadd.f32 %v2881_v35, %v2650_v10 }
 0x348   : > { %2978 = vst [vmem:[%s5160_s24 + $0xf0] sm:$0xff] %v2946_v12  ;;  %v2947_v21 = vmax.f32 %v2915_v4, 0.0 }
 0x349   : > { %2976 = vst [vmem:[%s5160_s24 + $0xe0] sm:$0xff] %v2944_v28  ;;  %v2945_v50 = vmax.f32 %v2913_v15, 0.0 }
 0x34a   : > { %2979 = vst [vmem:[%s5160_s24 + $0xf8] sm:$0xff] %v2947_v21 }
 0x34b   : > { %2977 = vst [vmem:[%s5160_s24 + $0xe8] sm:$0xff] %v2945_v50 }
 0x34c   : > { %4115 = shalt.err (!%p4112_p0)
}
 0x34d   : > { %s4116_s30 = scalar_lea.hbm %s5263_s29, 4096  ;;  %s4120_s7 = scalar_lea.hbm %s5384_s0, 8192 }
 0x34e   : > { %p4117_p7 = scmp.ne.s32.totalorder %s5263_s29, %s4116_s30  ;;  %p4121_p2 = scmp.lt.u32.totalorder %s5263_s29, %s5384_s0 }
 0x34f   : > { %p4122_p11 = scmp.lt.u32.totalorder %s4120_s7, %s4116_s30  ;;  %p4124_p6 = scmp.lt.u32.totalorder %s4116_s30, %s5263_s29 }
 0x350   : > { %p4118_p5 = pnand %p4117_p7, %p5385_p13 }
 0x351   : > { %p4123_p4 = por %p4122_p11, %p4121_p2 }
 0x352   : > { %p4119_p9 = pneg %p4118_p5 }
 0x353   : > { %p4125_p10 = por %p4124_p6, %p4123_p4 }
 0x355   : > { %p4126_p1 = pnand %p4125_p10, %p4119_p9 }
 0x357   : > { %4129 = shalt.err (!%p4126_p1)
}
 0x358   : > { %s4214_s21 = smov 128   ;;  %s4215_s18 = smov 8  }
 0x359   : > { %3737 = dma.vmem_to_hbm [thread:$0]  (%p5385_p13), %s5265_s20, 4096, %s5263_s29, %s2981_s17, %s4214_s21, %s4214_s21, %s4215_s18  }
 0x35a PF: > { %s5386_s14 = sld [smem:[#allocation21_spill]]  ;;  %s5387_s13 = sld [smem:[#allocation24_spill]] }
 0x35b   : > { %s5388_s1 = sld [smem:[#allocation23_spill]] }
 0x360   : > { %s3009_s15 = sand.u32 1, %s5386_s14   ;;  %p5389_p8 = scmp.ne.s32.totalorder %s5387_s13, 0 }
 0x361   : > { %p5390_p12 = scmp.ge.s32.totalorder %s5388_s1, 2  ;;  %s3010_s27 = scalar_lea.sflag [#allocation7], %s3009_s15 }
 0x363   : > { %p3757_p3 = pnand %p5390_p12, %p5389_p8 }
 0x365   : > { %4175 = dma.done.wait (!%p3757_p3), %s3010_s27, 4096  }
 0x366   : > { %4177 = vsyncadd (!%p3757_p3), %s3010_s27, 4294963200  ;;  %s25_s29 = sadd.s32 1, %s5388_s1   ;;  %s5391_s16 = sld [smem:[#allocation27_spill]] }
 0x367   : > { %p22_p0 = scmp.ge.s32.totalorder %s25_s29, 4   ;;  %s5392_s8 = sld [smem:[#allocation25_spill]] }
 0x368   : > { %s5393_s24 = smov %s4184_s25  ;;  %s5394_s25 = smov %s4188_s26 }
 0x369   : > { %s5396_s27 = smov %s4196_s28  ;;  %24 = sbr.rel (!%p22_p0) target bundleno = 12 (0xc), region = 125 }
 0x36c   : > { %s5395_s26 = smov %s5391_s16 }
 0x36d   : > { %s5397_s28 = smov %s5392_s8 }
 0x370   :  { %3015 = vsyncpa [#allocation6], 1 }
 0x371   :  { %3017 = vsyncpa [#allocation6 + $0x1], 1 }
 0x372   :  { %3018 = vsyncpa [#allocation9], 1 }
 0x373   :  { %3019 = vsyncpa [#allocation13], 1 }
 0x374   :  { %3020 = vsyncpa [#allocation7], 1 }
 0x375   :  { %3022 = vsyncpa [#allocation7 + $0x1], 1 }

</bundles_post_ra>
